<compile_context>
chip_gen: v7x
topology: tpu7x:2x2x1
jax: 0.10.0
libtpu: 0.0.40
codegen_flags: <defaults>
</compile_context>

<pallas_src>
import math

import jax
import jax.numpy as jnp
from jax import lax
from jax.experimental import pallas as pl
from jax.experimental.pallas import tpu as pltpu


_INV_SQRT2 = 1.0 / math.sqrt(2.0)
_TANH_C = math.sqrt(2.0 / math.pi)


def _gelu_exact(x):
    # torch.nn.GELU() default: exact erf-based GELU, computed in f32.
    return 0.5 * x * (1.0 + lax.erf(x * _INV_SQRT2))


def _gelu_tanh(x):
    # tanh approximation (goes to the EUP slot; optional on v6e/v7x).
    return 0.5 * x * (1.0 + jnp.tanh(_TANH_C * (x + 0.044715 * x * x * x)))


def _round_up(v, m):
    return ((v + m - 1) // m) * m


def _pad_to(a, shape):
    pads = [(0, s - d) for d, s in zip(a.shape, shape)]
    if all(p == (0, 0) for p in pads):
        return a
    return jnp.pad(a, pads)


def _pick_block_b(B, row_bytes, fixed_bytes, budget_bytes):
    """Largest batch tile (divisor of B, multiple of 16/8 or == B) fitting VMEM."""
    avail = budget_bytes - fixed_bytes
    if avail <= 0:
        avail = budget_bytes // 4
    cap = max(int(avail // max(row_bytes, 1)), 8)
    if B <= cap:
        return B                      # nb == 1: weights streamed exactly once
    limit = min(cap, B - 1)
    c = (limit // 16) * 16
    while c >= 16:                    # multiple of 16 (bf16 sublane packing)
        if B % c == 0:
            return c
        c -= 16
    c = (limit // 8) * 8
    while c >= 8:                     # fall back to f32 sublane alignment
        if B % c == 0:
            return c
        c -= 8
    return B                          # no aligned divisor: single full-batch tile


# ----------------------------------------------------------------------------
# Kernels
# ----------------------------------------------------------------------------
def _make_resident_kernel(num_hidden_mats, gelu_fn):
    """All weights VMEM-resident; hidden layers unrolled in-kernel (static)."""

    def kernel(x_ref, w_in_ref, b_in_ref, w_hid_ref, b_hid_ref,
               w_out_ref, b_out_ref, o_ref):
        h = jnp.dot(x_ref[...], w_in_ref[...],
                    preferred_element_type=jnp.float32)
        h = gelu_fn(h + b_in_ref[...]).astype(w_in_ref.dtype)
        for l in range(num_hidden_mats):          # static unroll
            a = jnp.dot(h, w_hid_ref[l], preferred_element_type=jnp.float32)
            h = gelu_fn(a + b_hid_ref[l]).astype(w_hid_ref.dtype)
        out = jnp.dot(h, w_out_ref[...], preferred_element_type=jnp.float32)
        o_ref[...] = (out + b_out_ref[...]).astype(o_ref.dtype)

    def kernel_no_hidden(x_ref, w_in_ref, b_in_ref, w_out_ref, b_out_ref,
                         o_ref):
        h = jnp.dot(x_ref[...], w_in_ref[...],
                    preferred_element_type=jnp.float32)
        h = gelu_fn(h + b_in_ref[...]).astype(w_in_ref.dtype)
        out = jnp.dot(h, w_out_ref[...], preferred_element_type=jnp.float32)
        o_ref[...] = (out + b_out_ref[...]).astype(o_ref.dtype)

    return kernel if num_hidden_mats >= 1 else kernel_no_hidden


def _make_stream_kernel(gelu_fn):
    """grid = (batch_tiles, Lm1): one hidden-weight block per layer step.

    Step l == 0       : input projection + GELU  (writes h scratch)
    Every step l      : hidden layer l           (h <- GELU(h @ W_hid[l] + b))
    Step l == nl - 1  : output projection, lane-dense store to o_ref
    """

    def kernel(x_ref, w_in_ref, b_in_ref, w_hid_ref, b_hid_ref,
               w_out_ref, b_out_ref, o_ref, h_ref):
        l = pl.program_id(1)
        nl = pl.num_programs(1)

        @pl.when(l == 0)
        def _input_layer():
            a = jnp.dot(x_ref[...], w_in_ref[...],
                        preferred_element_type=jnp.float32)
            h_ref[...] = gelu_fn(a + b_in_ref[...]).astype(h_ref.dtype)

        a = jnp.dot(h_ref[...], w_hid_ref[0],
                    preferred_element_type=jnp.float32)
        h_ref[...] = gelu_fn(a + b_hid_ref[0]).astype(h_ref.dtype)

        @pl.when(l == nl - 1)
        def _output_layer():
            out = jnp.dot(h_ref[...], w_out_ref[...],
                          preferred_element_type=jnp.float32)
            o_ref[...] = (out + b_out_ref[...]).astype(o_ref.dtype)

    return kernel


# ----------------------------------------------------------------------------
# Wrapper
# ----------------------------------------------------------------------------
def flow_model_forward(x, params, num_hidden_layers, *, block_b=None,
                       compute_dtype=jnp.bfloat16, approx_gelu=False,
                       force_stream=False, num_batch_tiles=None,
                       vmem_budget_bytes=48 * 1024 * 1024):
    """FlowModel forward pass as a single fused Pallas kernel.

    x: (B, latent_dim + 1).  Weights stored as (in_features, out_features).
    Matmuls run in `compute_dtype` with f32 accumulation; bias add + GELU in
    f32; inter-layer activations stored in `compute_dtype`.
    """
    assert num_hidden_layers >= 1
    B, din = x.shape
    H = params["w_in"].shape[1]
    dout = params["w_out"].shape[1]
    assert params["w_in"].shape[0] == din
    Lm1 = num_hidden_layers - 1

    # Lane-align hidden / output feature dims (exact GELU(0)==0, so the
    # zero-padded channels stay identically zero through the network).
    H_pad = _round_up(H, 128)
    dout_pad = _round_up(dout, 128)

    cdt = jnp.dtype(compute_dtype)
    w_in = _pad_to(params["w_in"], (din, H_pad)).astype(cdt)
    b_in = _pad_to(params["b_in"], (1, H_pad)).astype(jnp.float32)
    w_out = _pad_to(params["w_out"], (H_pad, dout_pad)).astype(cdt)
    b_out = _pad_to(params["b_out"], (1, dout_pad)).astype(jnp.float32)
    if Lm1 >= 1:
        w_hid = _pad_to(params["w_hid"], (Lm1, H_pad, H_pad)).astype(cdt)
        b_hid = _pad_to(params["b_hid"], (Lm1, 1, H_pad)).astype(jnp.float32)
    else:
        w_hid = b_hid = None
    xc = x.astype(cdt)
    out_dtype = x.dtype
    gelu_fn = _gelu_tanh if approx_gelu else _gelu_exact

    # ------------------------------------------------------------------ VMEM
    def _nbytes(a):
        return 0 if a is None else int(a.size) * a.dtype.itemsize

    resident_w_bytes = (_nbytes(w_in) + _nbytes(b_in) + _nbytes(w_hid) +
                        _nbytes(b_hid) + _nbytes(w_out) + _nbytes(b_out))
    # Resident path when the (possibly double-buffered) weight stack takes at
    # most half the budget, leaving room for a large batch tile.
    use_resident = (Lm1 == 0) or (not force_stream and
                                  2 * resident_w_bytes <= vmem_budget_bytes // 2)

    csz = cdt.itemsize
    osz = jnp.dtype(out_dtype).itemsize
    # Per-batch-row VMEM: x (2 bufs), out (2 bufs), h activation (compute
    # dtype) + f32 matmul temporaries.
    row_bytes = 2 * din * csz + 2 * dout_pad * osz + H_pad * (csz + 4) + dout_pad * 4
    if use_resident:
        fixed_bytes = 2 * resident_w_bytes
    else:
        fixed_bytes = (2 * (_nbytes(w_in) + _nbytes(w_out)) + _nbytes(b_in) +
                       _nbytes(b_out) + 2 * (H_pad * H_pad * csz + H_pad * 4))

    if block_b is None:
        if num_batch_tiles is not None:          # e.g. 2 on v7x when MXU-bound
            assert B % num_batch_tiles == 0
            block_b = B // num_batch_tiles
        else:
            block_b = _pick_block_b(B, row_bytes, fixed_bytes, vmem_budget_bytes)
    assert B % block_b == 0, "block_b must divide the batch size"
    assert block_b == B or block_b % 8 == 0, \
        "block_b must be a multiple of 8 (sublane) or equal B"
    nb = B // block_b

    vmem_est = fixed_bytes + 2 * block_b * row_bytes
    vmem_limit = int(min(128 * 1024 * 1024, max(2 * vmem_est, 32 * 1024 * 1024)))

    flops = 2 * B * (din * H_pad + Lm1 * H_pad * H_pad + H_pad * dout_pad)
    cost = pl.CostEstimate(
        flops=int(flops),
        transcendentals=int(B * H_pad * num_hidden_layers),
        bytes_accessed=int(resident_w_bytes + _nbytes(xc) + B * dout_pad * osz))

    # -------------------------------------------------------------- resident
    if use_resident:
        kernel = _make_resident_kernel(Lm1, gelu_fn)
        in_specs = [
            pl.BlockSpec((block_b, din), lambda i: (i, 0)),
            pl.BlockSpec((din, H_pad), lambda i: (0, 0)),
            pl.BlockSpec((1, H_pad), lambda i: (0, 0)),
        ]
        in_arrays = [xc, w_in, b_in]
        if Lm1 >= 1:
            in_specs += [
                pl.BlockSpec((Lm1, H_pad, H_pad), lambda i: (0, 0, 0)),
                pl.BlockSpec((Lm1, 1, H_pad), lambda i: (0, 0, 0)),
            ]
            in_arrays += [w_hid, b_hid]
        in_specs += [
            pl.BlockSpec((H_pad, dout_pad), lambda i: (0, 0)),
            pl.BlockSpec((1, dout_pad), lambda i: (0, 0)),
        ]
        in_arrays += [w_out, b_out]

        out = pl.pallas_call(
            kernel,
            out_shape=jax.ShapeDtypeStruct((B, dout_pad), out_dtype),
            grid_spec=pltpu.PrefetchScalarGridSpec(
                num_scalar_prefetch=0,
                grid=(nb,),
                in_specs=in_specs,
                out_specs=pl.BlockSpec((block_b, dout_pad), lambda i: (i, 0)),
            ),
            compiler_params=pltpu.CompilerParams(
                dimension_semantics=("parallel",),
                vmem_limit_bytes=vmem_limit),
            cost_estimate=cost,
        )(*in_arrays)
        return out[:, :dout]

    # -------------------------------------------------------------- streaming
    stream_kernel = _make_stream_kernel(gelu_fn)

    def run_stream(single_buffer_const):
        def const2(shape):
            # Grid-constant operands: single-buffer when supported (saves VMEM,
            # notably on v7x's 64 MiB).
            if single_buffer_const:
                return pl.BlockSpec(shape, lambda i, l: (0, 0),
                                    pipeline_mode=pl.Buffered(1))
            return pl.BlockSpec(shape, lambda i, l: (0, 0))

        return pl.pallas_call(
            stream_kernel,
            out_shape=jax.ShapeDtypeStruct((B, dout_pad), out_dtype),
            grid_spec=pltpu.PrefetchScalarGridSpec(
                num_scalar_prefetch=0,
                grid=(nb, Lm1),
                in_specs=[
                    # batch tile of the input (resident across the layer axis)
                    pl.BlockSpec((block_b, din), lambda i, l: (i, 0)),
                    # input projection (constant block -> stays resident)
                    const2((din, H_pad)),
                    const2((1, H_pad)),
                    # one hidden-layer weight tile per layer step (pipelined)
                    pl.BlockSpec((1, H_pad, H_pad), lambda i, l: (l, 0, 0)),
                    pl.BlockSpec((1, 1, H_pad), lambda i, l: (l, 0, 0)),
                    # output projection (constant block -> stays resident)
                    const2((H_pad, dout_pad)),
                    const2((1, dout_pad)),
                ],
                out_specs=pl.BlockSpec((block_b, dout_pad),
                                       lambda i, l: (i, 0)),
                scratch_shapes=[pltpu.VMEM((block_b, H_pad), cdt)],
            ),
            compiler_params=pltpu.CompilerParams(
                dimension_semantics=("parallel", "arbitrary"),
                vmem_limit_bytes=vmem_limit),
            cost_estimate=cost,
        )(xc, w_in, b_in, w_hid, b_hid, w_out, b_out)

    try:
        out = run_stream(True)
    except Exception:
        # pipeline_mode=pl.Buffered(1) not supported by this jax build; fall
        # back to default double-buffering of the constant operands.
        out = run_stream(False)
    return out[:, :dout]


# ----------------------------------------------------------------------------
# Params + reference
# ----------------------------------------------------------------------------
def init_flow_model_params(key, latent_dim, hidden_size, num_hidden_layers,
                           dtype=jnp.float32):
    """Matches torch.nn.Linear default init (uniform +-1/sqrt(fan_in)).

    Weights stored as (in_features, out_features) so the kernel does x @ W + b.
    """
    def linear_init(k, fan_in, fan_out):
        kw, kb = jax.random.split(k)
        bound = 1.0 / math.sqrt(fan_in)
        w = jax.random.uniform(kw, (fan_in, fan_out), dtype, -bound, bound)
        b = jax.random.uniform(kb, (1, fan_out), dtype, -bound, bound)
        return w, b

    keys = jax.random.split(key, num_hidden_layers + 1)
    w_in, b_in = linear_init(keys[0], latent_dim + 1, hidden_size)

    Lm1 = num_hidden_layers - 1
    if Lm1 >= 1:
        ws, bs = [], []
        for l in range(Lm1):
            w, b = linear_init(keys[1 + l], hidden_size, hidden_size)
            ws.append(w)
            bs.append(b)
        w_hid = jnp.stack(ws, axis=0)             # (Lm1, H, H)
        b_hid = jnp.stack(bs, axis=0)             # (Lm1, 1, H)
    else:
        w_hid, b_hid = None, None

    w_out, b_out = linear_init(keys[-1], hidden_size, latent_dim)
    return dict(w_in=w_in, b_in=b_in, w_hid=w_hid, b_hid=b_hid,
                w_out=w_out, b_out=b_out)


def flow_model_reference(x, params, num_hidden_layers,
                         compute_dtype=jnp.bfloat16):
    """Pure-JAX reference with the same mixed-precision recipe as the kernel."""
    def dense(h, w, b):
        acc = jnp.dot(h.astype(compute_dtype), w.astype(compute_dtype),
                      preferred_element_type=jnp.float32)
        return acc + b[0].astype(jnp.float32)

    h = _gelu_exact(dense(x, params["w_in"], params["b_in"]))
    for l in range(num_hidden_layers - 1):
        h = _gelu_exact(dense(h, params["w_hid"][l], params["b_hid"][l]))
    return dense(h, params["w_out"], params["b_out"]).astype(x.dtype)


if __name__ == "__main__":
    key = jax.random.PRNGKey(0)
    kx, kp, kx1, kp1 = jax.random.split(key, 4)

    # ---- Multi-hidden-layer config (resident path: nb=1, in-kernel layer loop) ----
    latent_dim, hidden_size, num_hidden_layers, batch = 4, 32, 3, 256
    x = jax.random.normal(kx, (batch, latent_dim + 1), dtype=jnp.float32)
    params = init_flow_model_params(kp, latent_dim, hidden_size,
                                    num_hidden_layers)

    out = flow_model_forward(x, params, num_hidden_layers)
    out = jax.block_until_ready(out)
    assert out.shape == (batch, latent_dim)

    ref = flow_model_reference(x, params, num_hidden_layers)
    assert jnp.allclose(out, ref, rtol=1e-3, atol=1e-3), "mismatch vs bf16 reference"

    # Loose sanity check against a full-f32 reference (bf16 matmuls differ a bit).
    ref_f32 = flow_model_reference(x, params, num_hidden_layers,
                                   compute_dtype=jnp.float32)
    assert jnp.allclose(out, ref_f32, rtol=5e-2, atol=5e-2), "mismatch vs f32 reference"

    # ---- Streaming path (large-H fallback), forced here at small shapes ----
    out_s = flow_model_forward(x, params, num_hidden_layers, force_stream=True)
    out_s = jax.block_until_ready(out_s)
    assert out_s.shape == (batch, latent_dim)
    assert jnp.allclose(out_s, ref, rtol=1e-3, atol=1e-3), "mismatch (streaming path)"

    # ---- num_hidden_layers == 1 path (no hidden-weight stack at all) ----
    x1 = jax.random.normal(kx1, (64, latent_dim + 1), dtype=jnp.float32)
    params1 = init_flow_model_params(kp1, latent_dim, hidden_size, 1)
    out1 = jax.block_until_ready(flow_model_forward(x1, params1, 1))
    ref1 = flow_model_reference(x1, params1, 1)
    assert out1.shape == (64, latent_dim)
    assert jnp.allclose(out1, ref1, rtol=1e-3, atol=1e-3), "mismatch (L=1 path)"

    print("KERNEL_OK")
</pallas_src>

<mosaic_0001>
module attributes {stable_mosaic.version = 11 : i64} {
  func.func @kernel(%arg0: i32, %arg1: memref<256x5xbf16, #tpu.memory_space<vmem>>, %arg2: memref<5x128xbf16, #tpu.memory_space<vmem>>, %arg3: memref<1x128xf32, #tpu.memory_space<vmem>>, %arg4: memref<2x128x128xbf16, #tpu.memory_space<vmem>>, %arg5: memref<2x1x128xf32, #tpu.memory_space<vmem>>, %arg6: memref<128x128xbf16, #tpu.memory_space<vmem>>, %arg7: memref<1x128xf32, #tpu.memory_space<vmem>>, %arg8: memref<256x128xf32, #tpu.memory_space<vmem>>) attributes {dimension_semantics = [#tpu.dimension_semantics<parallel>], iteration_bounds = array<i64: 1>, scalar_prefetch = 0 : i64, scratch_operands = 0 : i64, tpu.core_type = #tpu.core_type<tc>, window_params = [{transform_indices = @transform_0, window_bounds = array<i64: 256, 5>}, {pipeline_mode = #tpu.pipeline_mode<synchronous>, transform_indices = @transform_1, window_bounds = array<i64: 5, 128>}, {pipeline_mode = #tpu.pipeline_mode<synchronous>, transform_indices = @transform_2, window_bounds = array<i64: 1, 128>}, {pipeline_mode = #tpu.pipeline_mode<synchronous>, transform_indices = @transform_3, window_bounds = array<i64: 2, 128, 128>}, {pipeline_mode = #tpu.pipeline_mode<synchronous>, transform_indices = @transform_4, window_bounds = array<i64: 2, 1, 128>}, {pipeline_mode = #tpu.pipeline_mode<synchronous>, transform_indices = @transform_5, window_bounds = array<i64: 128, 128>}, {pipeline_mode = #tpu.pipeline_mode<synchronous>, transform_indices = @transform_6, window_bounds = array<i64: 1, 128>}, {transform_indices = @transform_7, window_bounds = array<i64: 256, 128>}]} {
    %c0 = arith.constant 0 : index
    %c0_0 = arith.constant 0 : index
    %0 = vector.load %arg1[%c0, %c0_0] : memref<256x5xbf16, #tpu.memory_space<vmem>>, vector<256x5xbf16>
    %c0_1 = arith.constant 0 : index
    %c0_2 = arith.constant 0 : index
    %1 = vector.load %arg2[%c0_1, %c0_2] : memref<5x128xbf16, #tpu.memory_space<vmem>>, vector<5x128xbf16>
    %cst = arith.constant dense<0.000000e+00> : vector<256x128xf32>
    %2 = tpu.matmul %0, %1, %cst {dimension_numbers = #tpu.dot_dimension_numbers<[1], [0], [0], [1], [0, 0, 1, 1], [], []>} : vector<256x5xbf16>, vector<5x128xbf16>, vector<256x128xf32> -> vector<256x128xf32>
    %c0_3 = arith.constant 0 : index
    %c0_4 = arith.constant 0 : index
    %3 = vector.load %arg3[%c0_3, %c0_4] : memref<1x128xf32, #tpu.memory_space<vmem>>, vector<1x128xf32>
    %4 = vector.broadcast %3 : vector<1x128xf32> to vector<256x128xf32>
    %5 = arith.addf %2, %4 : vector<256x128xf32>
    %cst_5 = arith.constant 5.000000e-01 : f32
    %6 = vector.broadcast %cst_5 : f32 to vector<256x128xf32>
    %7 = arith.mulf %6, %5 : vector<256x128xf32>
    %cst_6 = arith.constant 0.707106769 : f32
    %8 = vector.broadcast %cst_6 : f32 to vector<256x128xf32>
    %9 = arith.mulf %5, %8 : vector<256x128xf32>
    %10 = math.erf %9 : vector<256x128xf32>
    %cst_7 = arith.constant 1.000000e+00 : f32
    %11 = vector.broadcast %cst_7 : f32 to vector<256x128xf32>
    %12 = arith.addf %11, %10 : vector<256x128xf32>
    %13 = arith.mulf %7, %12 : vector<256x128xf32>
    %14 = arith.truncf %13 : vector<256x128xf32> to vector<256x128xbf16>
    %c0_8 = arith.constant 0 : index
    %c0_9 = arith.constant 0 : index
    %c0_10 = arith.constant 0 : index
    %15 = vector.load %arg4[%c0_8, %c0_9, %c0_10] : memref<2x128x128xbf16, #tpu.memory_space<vmem>>, vector<1x128x128xbf16>
    %16 = vector.shape_cast %15 : vector<1x128x128xbf16> to vector<128x128xbf16>
    %cst_11 = arith.constant dense<0.000000e+00> : vector<256x128xf32>
    %17 = tpu.matmul %14, %16, %cst_11 {dimension_numbers = #tpu.dot_dimension_numbers<[1], [0], [0], [1], [0, 0, 1, 1], [], []>} : vector<256x128xbf16>, vector<128x128xbf16>, vector<256x128xf32> -> vector<256x128xf32>
    %c0_12 = arith.constant 0 : index
    %c0_13 = arith.constant 0 : index
    %c0_14 = arith.constant 0 : index
    %18 = vector.load %arg5[%c0_12, %c0_13, %c0_14] : memref<2x1x128xf32, #tpu.memory_space<vmem>>, vector<1x1x128xf32>
    %19 = vector.shape_cast %18 : vector<1x1x128xf32> to vector<1x128xf32>
    %20 = vector.broadcast %19 : vector<1x128xf32> to vector<256x128xf32>
    %21 = arith.addf %17, %20 : vector<256x128xf32>
    %cst_15 = arith.constant 5.000000e-01 : f32
    %22 = vector.broadcast %cst_15 : f32 to vector<256x128xf32>
    %23 = arith.mulf %22, %21 : vector<256x128xf32>
    %cst_16 = arith.constant 0.707106769 : f32
    %24 = vector.broadcast %cst_16 : f32 to vector<256x128xf32>
    %25 = arith.mulf %21, %24 : vector<256x128xf32>
    %26 = math.erf %25 : vector<256x128xf32>
    %cst_17 = arith.constant 1.000000e+00 : f32
    %27 = vector.broadcast %cst_17 : f32 to vector<256x128xf32>
    %28 = arith.addf %27, %26 : vector<256x128xf32>
    %29 = arith.mulf %23, %28 : vector<256x128xf32>
    %30 = arith.truncf %29 : vector<256x128xf32> to vector<256x128xbf16>
    %c1 = arith.constant 1 : index
    %c0_18 = arith.constant 0 : index
    %c0_19 = arith.constant 0 : index
    %31 = vector.load %arg4[%c1, %c0_18, %c0_19] : memref<2x128x128xbf16, #tpu.memory_space<vmem>>, vector<1x128x128xbf16>
    %32 = vector.shape_cast %31 : vector<1x128x128xbf16> to vector<128x128xbf16>
    %cst_20 = arith.constant dense<0.000000e+00> : vector<256x128xf32>
    %33 = tpu.matmul %30, %32, %cst_20 {dimension_numbers = #tpu.dot_dimension_numbers<[1], [0], [0], [1], [0, 0, 1, 1], [], []>} : vector<256x128xbf16>, vector<128x128xbf16>, vector<256x128xf32> -> vector<256x128xf32>
    %c1_21 = arith.constant 1 : index
    %c0_22 = arith.constant 0 : index
    %c0_23 = arith.constant 0 : index
    %34 = vector.load %arg5[%c1_21, %c0_22, %c0_23] : memref<2x1x128xf32, #tpu.memory_space<vmem>>, vector<1x1x128xf32>
    %35 = vector.shape_cast %34 : vector<1x1x128xf32> to vector<1x128xf32>
    %36 = vector.broadcast %35 : vector<1x128xf32> to vector<256x128xf32>
    %37 = arith.addf %33, %36 : vector<256x128xf32>
    %cst_24 = arith.constant 5.000000e-01 : f32
    %38 = vector.broadcast %cst_24 : f32 to vector<256x128xf32>
    %39 = arith.mulf %38, %37 : vector<256x128xf32>
    %cst_25 = arith.constant 0.707106769 : f32
    %40 = vector.broadcast %cst_25 : f32 to vector<256x128xf32>
    %41 = arith.mulf %37, %40 : vector<256x128xf32>
    %42 = math.erf %41 : vector<256x128xf32>
    %cst_26 = arith.constant 1.000000e+00 : f32
    %43 = vector.broadcast %cst_26 : f32 to vector<256x128xf32>
    %44 = arith.addf %43, %42 : vector<256x128xf32>
    %45 = arith.mulf %39, %44 : vector<256x128xf32>
    %46 = arith.truncf %45 : vector<256x128xf32> to vector<256x128xbf16>
    %c0_27 = arith.constant 0 : index
    %c0_28 = arith.constant 0 : index
    %47 = vector.load %arg6[%c0_27, %c0_28] : memref<128x128xbf16, #tpu.memory_space<vmem>>, vector<128x128xbf16>
    %cst_29 = arith.constant dense<0.000000e+00> : vector<256x128xf32>
    %48 = tpu.matmul %46, %47, %cst_29 {dimension_numbers = #tpu.dot_dimension_numbers<[1], [0], [0], [1], [0, 0, 1, 1], [], []>} : vector<256x128xbf16>, vector<128x128xbf16>, vector<256x128xf32> -> vector<256x128xf32>
    %c0_30 = arith.constant 0 : index
    %c0_31 = arith.constant 0 : index
    %49 = vector.load %arg7[%c0_30, %c0_31] : memref<1x128xf32, #tpu.memory_space<vmem>>, vector<1x128xf32>
    %50 = vector.broadcast %49 : vector<1x128xf32> to vector<256x128xf32>
    %51 = arith.addf %48, %50 : vector<256x128xf32>
    %c0_32 = arith.constant 0 : index
    %c0_33 = arith.constant 0 : index
    %52 = vector.load %arg8[%c0_32, %c0_33] : memref<256x128xf32, #tpu.memory_space<vmem>>, vector<256x128xf32>
    tpu.vector_store %arg8[%c0_32, %c0_33], %51 {strides = array<i32>} : memref<256x128xf32, #tpu.memory_space<vmem>>, vector<256x128xf32>,
    return
  }
  func.func @transform_0(%arg0: i32) -> (i32, i32) {
    %c0_i32 = arith.constant 0 : i32
    %c0_i32_0 = arith.constant 0 : i32
    return %arg0, %c0_i32 : i32, i32
  }
  func.func @transform_1(%arg0: i32) -> (i32, i32) {
    %c0_i32 = arith.constant 0 : i32
    %c0_i32_0 = arith.constant 0 : i32
    %c0_i32_1 = arith.constant 0 : i32
    return %c0_i32, %c0_i32_0 : i32, i32
  }
  func.func @transform_2(%arg0: i32) -> (i32, i32) {
    %c0_i32 = arith.constant 0 : i32
    %c0_i32_0 = arith.constant 0 : i32
    %c0_i32_1 = arith.constant 0 : i32
    return %c0_i32, %c0_i32_0 : i32, i32
  }
  func.func @transform_3(%arg0: i32) -> (i32, i32, i32) {
    %c0_i32 = arith.constant 0 : i32
    %c0_i32_0 = arith.constant 0 : i32
    %c0_i32_1 = arith.constant 0 : i32
    %c0_i32_2 = arith.constant 0 : i32
    return %c0_i32, %c0_i32_0, %c0_i32_1 : i32, i32, i32
  }
  func.func @transform_4(%arg0: i32) -> (i32, i32, i32) {
    %c0_i32 = arith.constant 0 : i32
    %c0_i32_0 = arith.constant 0 : i32
    %c0_i32_1 = arith.constant 0 : i32
    %c0_i32_2 = arith.constant 0 : i32
    return %c0_i32, %c0_i32_0, %c0_i32_1 : i32, i32, i32
  }
  func.func @transform_5(%arg0: i32) -> (i32, i32) {
    %c0_i32 = arith.constant 0 : i32
    %c0_i32_0 = arith.constant 0 : i32
    %c0_i32_1 = arith.constant 0 : i32
    return %c0_i32, %c0_i32_0 : i32, i32
  }
  func.func @transform_6(%arg0: i32) -> (i32, i32) {
    %c0_i32 = arith.constant 0 : i32
    %c0_i32_0 = arith.constant 0 : i32
    %c0_i32_1 = arith.constant 0 : i32
    return %c0_i32, %c0_i32_0 : i32, i32
  }
  func.func @transform_7(%arg0: i32) -> (i32, i32) {
    %c0_i32 = arith.constant 0 : i32
    %c0_i32_0 = arith.constant 0 : i32
    return %arg0, %c0_i32 : i32, i32
  }
}

</mosaic_0001>

<bundles_post_ra>
// kernel: tpu_custom_call.1
= control target key start
LH: loop header
LB: loop body
LE: loop exit
PB: predicated region body
PF: predicated region fallthrough
CT: control target
= control target key end

     0   :  { %12 = vsyncpa [#allocation3], 0  ;;  %s2827_s0 = inlined_call_operand.vmem [shape: bf16[256,5], index: 0, kind: input, shape index: {}]   ;;  %s2828_s1 = inlined_call_operand.vmem [shape: bf16[5,128], index: 1, kind: input, shape index: {}]   ;;  %s2829_s2 = inlined_call_operand.vmem [shape: f32[1,128], index: 2, kind: input, shape index: {}]   ;;  %s2830_s3 = inlined_call_operand.vmem [shape: bf16[2,128,128], index: 3, kind: input, shape index: {}]   ;;  %s2831_s4 = inlined_call_operand.vmem [shape: f32[2,1,128], index: 4, kind: input, shape index: {}]   ;;  %s2832_s5 = inlined_call_operand.hbm [shape: bf16[128,128], index: 5, kind: input, shape index: {}]   ;;  %s2833_s6 = inlined_call_operand.vmem [shape: f32[1,128], index: 6, kind: input, shape index: {}]   ;;  %s2834_s7 = inlined_call_operand.hbm [shape: f32[256,128], index: 7, kind: output, shape index: {}]  }
   0x1   :  { %13 = vsyncpa [#allocation4], 0  ;;  %s2301_s24 = smov [#allocation2]   ;;  %s2253_s28 = scalar_lea.hbm %s2832_s5, 1024 }
   0x2   :  { %s29_s25 = sshll.u32 %s2301_s24, 4  ;;  %p2254_p0 = scmp.ne.s32.totalorder %s2832_s5, %s2253_s28  ;;  %s30_s25 = int_to_ptr.vmem [resolvable:$true] %s29_s25 }
   0x3   :  { %p2257_p1 = scmp.lt.u32.totalorder %s2253_s28, %s2832_s5 }
   0x5   :  { %p2259_p2 = pnand %p2257_p1, %p2254_p0 }
   0x7   :  { %2262 = shalt.err (!%p2259_p2)
}
   0x8   :  { %s2263_s10 = scalar_lea.vmem %s30_s25, 1024  ;;  %p2268_p4 = scmp.lt.s32.totalorder %s30_s25, %s30_s25 }
   0x9   :  { %p2264_p3 = scmp.ne.s32.totalorder %s30_s25, %s2263_s10  ;;  %p2269_p5 = scmp.lt.s32.totalorder %s2263_s10, %s2263_s10 }
   0xb   :  { %p2270_p6 = por %p2269_p5, %p2268_p4 }
   0xd   :  { %p2271_p7 = pnand %p2270_p6, %p2264_p3 }
   0xf   :  { %2274 = shalt.err (!%p2271_p7)
}
  0x10   :  { %s2302_s11 = smov 64   ;;  %s2303_s12 = smov 4  }
  0x11   :  { %35 = dma.hbm_to_vmem [thread:$0]  %s2832_s5, 1024, %s30_s25, [#allocation3], %s2302_s11, %s2302_s11, %s2303_s12  }
  0x12   :  { %2297 = dma.done.wait [#allocation3], 1024  }
  0x13   :  { %2298 = vsyncadd [#allocation3], 4294966272  ;;  %vm211_vm0 = vcmask 1041408   ;;  %vm212_vm1 = vcmask 1042432   ;;  %v2304_v0 = vmov 65535   ;;  %vm162_vm2 = vcmask 39936  }
  0x14   :  { %v213_v1 = vsel %vm211_vm0, 4294967295, %v2304_v0  ;;  %v74_v3 = vld [vmem:[%s2828_s1] sm:$0x7]  ;;  %v2022_v6 = vld [vmem:[%s2827_s0 + $0x8] sm:$0xff]   ;;  %v2023_v7 = vld [vmem:[%s2827_s0 + $0x10] sm:$0xff]  }
  0x15   :  { %v214_v2 = vsel %vm212_vm1, %v213_v1, 0  ;;  %v2021_v5 = vld [vmem:[%s2827_s0] sm:$0xff]   ;;  %v2024_v8 = vld [vmem:[%s2827_s0 + $0x18] sm:$0xff]   ;;  %v2026_v10 = vld [vmem:[%s2827_s0 + $0x28] sm:$0xff]  }
  0x16   :  { %v216_v4 = vand.u32 %v214_v2, %v74_v3  ;;  %1822 = vmatprep.mubr.msk.bf16.mxu0 %vm162_vm2, %v2021_v5  ;;  %v2025_v9 = vld [vmem:[%s2827_s0 + $0x20] sm:$0xff]   ;;  %v2027_v12 = vld [vmem:[%s2827_s0 + $0x30] sm:$0xff]   ;;  %v2038_v13 = vld [vmem:[%s2830_s3 + $0x8] sm:$0xff]  }
  0x17   :  { %v2037_v11 = vld [vmem:[%s2830_s3] sm:$0xff]   ;;  %v2028_v14 = vld [vmem:[%s2827_s0 + $0x38] sm:$0xff]   ;;  %v2030_v16 = vld [vmem:[%s2827_s0 + $0x48] sm:$0xff]  }
  0x18   :  { %1820 = vmatprep.subr.bf16.mxu0 %v216_v4  ;;  %1854 = vmatprep.subr.bf16.mxu1 %v2037_v11  ;;  %v2029_v15 = vld [vmem:[%s2827_s0 + $0x40] sm:$0xff]   ;;  %v2031_v17 = vld [vmem:[%s2827_s0 + $0x50] sm:$0xff]   ;;  %v2032_v18 = vld [vmem:[%s2827_s0 + $0x58] sm:$0xff]  }
  0x19   :  { %1821 = vmatpush3.bf16.msra.mxu0 %v216_v4  ;;  %1855 = vmatpush3.bf16.msra.mxu1 %v2037_v11  ;;  %v2033_v19 = vld [vmem:[%s2827_s0 + $0x60] sm:$0xff]   ;;  %v2034_v20 = vld [vmem:[%s2827_s0 + $0x68] sm:$0xff]   ;;  %v2035_v21 = vld [vmem:[%s2827_s0 + $0x70] sm:$0xff]  }
  0x1a   :  { %1856 = vmatprep.subr.bf16.mxu1 %v2038_v13  ;;  %v2036_v22 = vld [vmem:[%s2827_s0 + $0x78] sm:$0xff]   ;;  %v2039_v23 = vld [vmem:[%s2830_s3 + $0x10] sm:$0xff]   ;;  %v2041_v25 = vld [vmem:[%s2830_s3 + $0x20] sm:$0xff]  }
  0x1b   :  { %v2040_v24 = vld [vmem:[%s2830_s3 + $0x18] sm:$0xff]   ;;  %v2042_v26 = vld [vmem:[%s2830_s3 + $0x28] sm:$0xff]   ;;  %v2043_v27 = vld [vmem:[%s2830_s3 + $0x30] sm:$0xff]  }
  0x1c   :  { %1823 = vmatmul.mubr.msk.bf16.vlgmr.msra.gmra.mrb[0].mxu0 %vm162_vm2, %v2022_v6  ;;  %v2044_v28 = vld [vmem:[%s2830_s3 + $0x38] sm:$0xff]   ;;  %v2045_v29 = vld [vmem:[%s2830_s3 + $0x40] sm:$0xff]   ;;  %v2046_v30 = vld [vmem:[%s2830_s3 + $0x48] sm:$0xff]  }
  0x1d   :  { %1826 = vmatprep.mubr.msk.bf16.mxu0 %vm162_vm2, %v2023_v7  ;;  %1857 = vmatpush3.bf16.msra.mxu1 %v2038_v13  ;;  %v2047_v31 = vld [vmem:[%s2830_s3 + $0x50] sm:$0xff]   ;;  %v2048_v32 = vld [vmem:[%s2830_s3 + $0x58] sm:$0xff]   ;;  %v2049_v33 = vld [vmem:[%s2830_s3 + $0x60] sm:$0xff]  }
  0x1e   :  { %1858 = vmatprep.subr.bf16.mxu1 %v2039_v23  ;;  %1902 = vmatprep.subr.bf16.mxu0 %v2045_v29  ;;  %v2469_v34 = vld [vmem:[%s2829_s2] ss:$0 sm:$0xff] }
  0x1f   :  { %1903 = vmatpush3.bf16.msra.mxu0 %v2045_v29 }
  0x20   :  { %1904 = vmatprep.subr.bf16.mxu0 %v2046_v30 }
  0x21   :  { %1859 = vmatpush3.bf16.msra.mxu1 %v2039_v23 }
  0x22   :  { %1860 = vmatprep.subr.bf16.mxu1 %v2040_v24 }
  0x23   :  { %1905 = vmatpush3.bf16.msra.mxu0 %v2046_v30 }
  0x24   :  { %1827 = vmatmul.mubr.msk.bf16.gmra.mrb[4].mxu0 %vm162_vm2, %v2024_v8  ;;  %1906 = vmatprep.subr.bf16.mxu0 %v2047_v31 }
  0x25   :  { %1830 = vmatprep.mubr.msk.bf16.mxu0 %vm162_vm2, %v2025_v9  ;;  %1861 = vmatpush3.bf16.msra.mxu1 %v2040_v24 }
  0x26   :  { %1862 = vmatprep.subr.bf16.mxu1 %v2041_v25 }
  0x27   :  { %1907 = vmatpush3.bf16.msra.mxu0 %v2047_v31 }
  0x28   :  { %1908 = vmatprep.subr.bf16.mxu0 %v2048_v32 }
  0x29   :  { %1863 = vmatpush3.bf16.msra.mxu1 %v2041_v25 }
  0x2a   :  { %1864 = vmatprep.subr.bf16.mxu1 %v2042_v26 }
  0x2b   :  { %1909 = vmatpush3.bf16.msra.mxu0 %v2048_v32 }
  0x2c   :  { %1831 = vmatmul.mubr.msk.bf16.gmra.mrb[8].mxu0 %vm162_vm2, %v2026_v10  ;;  %1910 = vmatprep.subr.bf16.mxu0 %v2049_v33 }
  0x2d   :  { %1834 = vmatprep.mubr.msk.bf16.mxu0 %vm162_vm2, %v2027_v12  ;;  %1865 = vmatpush3.bf16.msra.mxu1 %v2042_v26 }
  0x2e   :  { %1866 = vmatprep.subr.bf16.mxu1 %v2043_v27 }
  0x2f   :  { %1911 = vmatpush3.bf16.msra.mxu0 %v2049_v33 }
  0x31   :  { %1867 = vmatpush3.bf16.msra.mxu1 %v2043_v27 }
  0x32   :  { %1868 = vmatprep.subr.bf16.mxu1 %v2044_v28 }
  0x34   :  { %1835 = vmatmul.mubr.msk.bf16.gmra.mrb[12].mxu0 %vm162_vm2, %v2028_v14 }
  0x35   :  { %1838 = vmatprep.mubr.msk.bf16.mxu0 %vm162_vm2, %v2029_v15  ;;  %1869 = vmatpush3.bf16.msra.mxu1 %v2044_v28 }
  0x3c   :  { %1839 = vmatmul.mubr.msk.bf16.gmra.mrb[16].mxu0 %vm162_vm2, %v2030_v16 }
  0x3d   :  { %1842 = vmatprep.mubr.msk.bf16.mxu0 %vm162_vm2, %v2031_v17 }
  0x44   :  { %1843 = vmatmul.mubr.msk.bf16.gmra.mrb[20].mxu0 %vm162_vm2, %v2032_v18 }
  0x45   :  { %1846 = vmatprep.mubr.msk.bf16.mxu0 %vm162_vm2, %v2033_v19 }
  0x4c   :  { %1847 = vmatmul.mubr.msk.bf16.gmra.mrb[24].mxu0 %vm162_vm2, %v2034_v20 }
  0x4d   :  { %1850 = vmatprep.mubr.msk.bf16.mxu0 %vm162_vm2, %v2035_v21 }
  0x54   :  { %1851 = vmatmul.mubr.msk.bf16.gmra.mrb[28].mxu0 %vm162_vm2, %v2036_v22 }
  0xef   :  { %v1824_v35 = vpop.f32.mrb[0].mxu0 }
  0xf0   :  { %v261_v36 = vadd.f32 %v1824_v35, %v2469_v34  ;;  %v252_v37 = vpop.f32.mrb[1].mxu0 }
  0xf1   :  { %v253_v38 = vadd.f32 %v2469_v34, %v252_v37  ;;  %v1825_v39 = vpop.f32.mrb[2].mxu0 }
  0xf2   :  { %v413_v40 = vmul.f32 0.70710677, %v261_v36  ;;  %v264_v41 = vadd.f32 %v1825_v39, %v2469_v34  ;;  %v255_v42 = vpop.f32.mrb[3].mxu0  ;;  %v381_v63 = vmul.f32 0.5, %v261_v36 }
  0xf3   :  { %v411_v43 = vmul.f32 0.70710677, %v253_v38  ;;  %v256_v44 = vadd.f32 %v2469_v34, %v255_v42  ;;  %v379_v9 = vmul.f32 0.5, %v253_v38 }
  0xf4   :  { %2061 = verf.f32 %v413_v40  ;;  %v414_v45 = vmul.f32 0.70710677, %v264_v41  ;;  %v382_v4 = vmul.f32 0.5, %v264_v41 }
  0xf5   :  { %2063 = verf.f32 %v411_v43  ;;  %v412_v46 = vmul.f32 0.70710677, %v256_v44  ;;  %v380_v15 = vmul.f32 0.5, %v256_v44 }
  0xf6   :  { %2065 = verf.f32 %v414_v45 }
  0xf7   :  { %2067 = verf.f32 %v412_v46  ;;  %v1828_v47 = vpop.f32.mrb[4].mxu0 }
  0xf8   :  { %v277_v48 = vadd.f32 %v1828_v47, %v2469_v34  ;;  %v268_v49 = vpop.f32.mrb[5].mxu0 }
  0xf9   :  { %v269_v50 = vadd.f32 %v2469_v34, %v268_v49  ;;  %v1829_v51 = vpop.f32.mrb[6].mxu0 }
  0xfa   :  { %v417_v52 = vmul.f32 0.70710677, %v277_v48  ;;  %v280_v53 = vadd.f32 %v1829_v51, %v2469_v34  ;;  %v271_v54 = vpop.f32.mrb[7].mxu0  ;;  %v385_v35 = vmul.f32 0.5, %v277_v48 }
  0xfb   :  { %v415_v55 = vmul.f32 0.70710677, %v269_v50  ;;  %v272_v56 = vadd.f32 %v2469_v34, %v271_v54  ;;  %v383_v40 = vmul.f32 0.5, %v269_v50 }
  0xfc   :  { %2069 = verf.f32 %v417_v52  ;;  %v418_v57 = vmul.f32 0.70710677, %v280_v53  ;;  %v386_v36 = vmul.f32 0.5, %v280_v53 }
  0xfd   :  { %2071 = verf.f32 %v415_v55  ;;  %v416_v58 = vmul.f32 0.70710677, %v272_v56  ;;  %v384_v41 = vmul.f32 0.5, %v272_v56 }
  0xfe   :  { %v2062_v59 = vpop.eup %2061  ;;  %2073 = verf.f32 %v418_v57 }
  0xff   :  { %v2064_v60 = vpop.eup %2063  ;;  %2075 = verf.f32 %v416_v58  ;;  %v1832_v61 = vpop.f32.mrb[8].mxu0  ;;  %v477_v0 = vadd.f32 1.0, %v2062_v59 }
 0x100   :  { %v2066_v62 = vpop.eup %2065  ;;  %v2480_v1 = vadd.f32 %v1832_v61, %v2469_v34  ;;  %v284_v2 = vpop.f32.mrb[9].mxu0  ;;  %v475_v8 = vadd.f32 1.0, %v2064_v60 }
 0x101   :  { %v2068_v3 = vpop.eup %2067  ;;  %v478_v5 = vadd.f32 1.0, %v2066_v62  ;;  %v2483_v6 = vadd.f32 %v2469_v34, %v284_v2  ;;  %v1833_v7 = vpop.f32.mrb[10].mxu0  ;;  %v509_v18 = vmul.f32 %v477_v0, %v381_v63 }
 0x102   :  { %v421_v10 = vmul.f32 0.70710677, %v2480_v1  ;;  %v2487_v11 = vadd.f32 %v1833_v7, %v2469_v34  ;;  %v287_v12 = vpop.f32.mrb[11].mxu0  ;;  %v476_v13 = vadd.f32 1.0, %v2068_v3  ;;  %v507_v21 = vmul.f32 %v475_v8, %v379_v9 }
 0x103   :  { %v510_v14 = vmul.f32 %v478_v5, %v382_v4  ;;  %v419_v16 = vmul.f32 0.70710677, %v2483_v6  ;;  %v2491_v17 = vadd.f32 %v2469_v34, %v287_v12  ;;  %v389_v2 = vmul.f32 0.5, %v2480_v1 }
 0x104   :  { %2077 = verf.f32 %v421_v10  ;;  %v422_v19 = vmul.f32 0.70710677, %v2487_v11  ;;  %v508_v22 = vmul.f32 %v476_v13, %v380_v15  ;;  %v390_v3 = vmul.f32 0.5, %v2487_v11 }
 0x105   :  { %2079 = verf.f32 %v419_v16  ;;  %v420_v20 = vmul.f32 0.70710677, %v2491_v17  ;;  %v540_v24 = vpack.c.bf16 %v510_v14, %v509_v18  ;;  %v387_v8 = vmul.f32 0.5, %v2483_v6 }
 0x106   :  { %v2070_v23 = vpop.eup %2069  ;;  %2081 = verf.f32 %v422_v19  ;;  %v539_v28 = vpack.c.bf16 %v508_v22, %v507_v21  ;;  %v388_v9 = vmul.f32 0.5, %v2491_v17 }
 0x107   :  { %v2072_v25 = vpop.eup %2071  ;;  %v481_v26 = vadd.f32 1.0, %v2070_v23  ;;  %2083 = verf.f32 %v420_v20  ;;  %v1836_v27 = vpop.f32.mrb[12].mxu0 }
 0x108   :  { %v2074_v29 = vpop.eup %2073  ;;  %v479_v30 = vadd.f32 1.0, %v2072_v25  ;;  %v2496_v31 = vadd.f32 %v1836_v27, %v2469_v34  ;;  %v300_v32 = vpop.f32.mrb[13].mxu0  ;;  %1870 = vmatprep.mubr.bf16.mxu1 %v539_v28 }
 0x109   :  { %v2076_v33 = vpop.eup %2075  ;;  %v482_v37 = vadd.f32 1.0, %v2074_v29  ;;  %v2499_v38 = vadd.f32 %v2469_v34, %v300_v32  ;;  %v1837_v39 = vpop.f32.mrb[14].mxu0  ;;  %1871 = vmatmul.mubr.bf16.vlgmr.msra.gmra.mrb[0].mxu1 %v540_v24  ;;  %v513_v45 = vmul.f32 %v481_v26, %v385_v35 }
 0x10a   :  { %v480_v42 = vadd.f32 1.0, %v2076_v33  ;;  %v425_v43 = vmul.f32 0.70710677, %v2496_v31  ;;  %v303_v44 = vpop.f32.mrb[15].mxu0  ;;  %v312_v48 = vadd.f32 %v1837_v39, %v2469_v34  ;;  %v511_v49 = vmul.f32 %v479_v30, %v383_v40 }
 0x10b   :  { %v514_v46 = vmul.f32 %v482_v37, %v386_v36  ;;  %v423_v47 = vmul.f32 0.70710677, %v2499_v38  ;;  %v304_v52 = vadd.f32 %v2469_v34, %v303_v44  ;;  %v393_v29 = vmul.f32 0.5, %v2496_v31 }
 0x10c   :  { %v512_v51 = vmul.f32 %v480_v42, %v384_v41  ;;  %2085 = verf.f32 %v425_v43  ;;  %v426_v53 = vmul.f32 0.70710677, %v312_v48  ;;  %v391_v36 = vmul.f32 0.5, %v2499_v38 }
 0x10d   :  { %2087 = verf.f32 %v423_v47  ;;  %v542_v50 = vpack.c.bf16 %v514_v46, %v513_v45  ;;  %v424_v55 = vmul.f32 0.70710677, %v304_v52  ;;  %v394_v37 = vmul.f32 0.5, %v312_v48 }
 0x10e   :  { %v2078_v54 = vpop.eup %2077  ;;  %v541_v56 = vpack.c.bf16 %v512_v51, %v511_v49  ;;  %2089 = verf.f32 %v426_v53  ;;  %v392_v42 = vmul.f32 0.5, %v304_v52 }
 0x10f   :  { %v2080_v57 = vpop.eup %2079  ;;  %v485_v58 = vadd.f32 1.0, %v2078_v54  ;;  %v1840_v59 = vpop.f32.mrb[16].mxu0  ;;  %2091 = verf.f32 %v424_v55 }
 0x110   :  { %v2082_v60 = vpop.eup %2081  ;;  %v483_v61 = vadd.f32 1.0, %v2080_v57  ;;  %v2506_v62 = vadd.f32 %v1840_v59, %v2469_v34  ;;  %v316_v63 = vpop.f32.mrb[17].mxu0  ;;  %1874 = vmatprep.mubr.bf16.mxu1 %v541_v56 }
 0x111   :  { %v2084_v0 = vpop.eup %2083  ;;  %v486_v4 = vadd.f32 1.0, %v2082_v60  ;;  %v2511_v5 = vadd.f32 %v2469_v34, %v316_v63  ;;  %v1841_v7 = vpop.f32.mrb[18].mxu0  ;;  %1875 = vmatmul.mubr.bf16.gmra.mrb[4].mxu1 %v542_v50  ;;  %v517_v14 = vmul.f32 %v485_v58, %v389_v2 }
 0x112   :  { %v484_v10 = vadd.f32 1.0, %v2084_v0  ;;  %v429_v12 = vmul.f32 0.70710677, %v2506_v62  ;;  %v319_v13 = vpop.f32.mrb[19].mxu0  ;;  %v328_v11 = vadd.f32 %v1841_v7, %v2469_v34  ;;  %v515_v16 = vmul.f32 %v483_v61, %v387_v8 }
 0x113   :  { %v518_v15 = vmul.f32 %v486_v4, %v390_v3  ;;  %v427_v1 = vmul.f32 0.70710677, %v2511_v5  ;;  %v320_v19 = vadd.f32 %v2469_v34, %v319_v13  ;;  %v397_v60 = vmul.f32 0.5, %v2506_v62 }
 0x114   :  { %v516_v18 = vmul.f32 %v484_v10, %v388_v9  ;;  %2093 = verf.f32 %v429_v12  ;;  %v430_v6 = vmul.f32 0.70710677, %v328_v11  ;;  %v395_v3 = vmul.f32 0.5, %v2511_v5 }
 0x115   :  { %2095 = verf.f32 %v427_v1  ;;  %v544_v20 = vpack.c.bf16 %v518_v15, %v517_v14  ;;  %v428_v21 = vmul.f32 0.70710677, %v320_v19  ;;  %v398_v4 = vmul.f32 0.5, %v328_v11 }
 0x116   :  { %v2086_v17 = vpop.eup %2085  ;;  %v543_v22 = vpack.c.bf16 %v516_v18, %v515_v16  ;;  %2097 = verf.f32 %v430_v6  ;;  %v396_v10 = vmul.f32 0.5, %v320_v19 }
 0x117   :  { %v2088_v23 = vpop.eup %2087  ;;  %v1844_v24 = vpop.f32.mrb[20].mxu0  ;;  %v489_v25 = vadd.f32 1.0, %v2086_v17  ;;  %2099 = verf.f32 %v428_v21 }
 0x118   :  { %v2520_v26 = vadd.f32 %v1844_v24, %v2469_v34  ;;  %v332_v27 = vpop.f32.mrb[21].mxu0  ;;  %1878 = vmatprep.mubr.bf16.mxu1 %v543_v22  ;;  %v2090_v28 = vpop.eup %2089  ;;  %v487_v30 = vadd.f32 1.0, %v2088_v23 }
 0x119   :  { %v2524_v32 = vadd.f32 %v2469_v34, %v332_v27  ;;  %v1845_v33 = vpop.f32.mrb[22].mxu0  ;;  %v2092_v35 = vpop.eup %2091  ;;  %v490_v39 = vadd.f32 1.0, %v2090_v28  ;;  %1879 = vmatmul.mubr.bf16.gmra.mrb[8].mxu1 %v544_v20  ;;  %v521_v45 = vmul.f32 %v489_v25, %v393_v29 }
 0x11a   :  { %v433_v40 = vmul.f32 0.70710677, %v2520_v26  ;;  %v335_v41 = vpop.f32.mrb[23].mxu0  ;;  %v488_v43 = vadd.f32 1.0, %v2092_v35  ;;  %v2530_v31 = vadd.f32 %v1845_v33, %v2469_v34  ;;  %v519_v38 = vmul.f32 %v487_v30, %v391_v36 }
 0x11b   :  { %v431_v44 = vmul.f32 0.70710677, %v2524_v32  ;;  %v522_v46 = vmul.f32 %v490_v39, %v394_v37  ;;  %v2533_v47 = vadd.f32 %v2469_v34, %v335_v41  ;;  %v401_v27 = vmul.f32 0.5, %v2520_v26 }
 0x11c   :  { %2101 = verf.f32 %v433_v40  ;;  %v520_v48 = vmul.f32 %v488_v43, %v392_v42  ;;  %v434_v49 = vmul.f32 0.70710677, %v2530_v31  ;;  %v399_v35 = vmul.f32 0.5, %v2524_v32 }
 0x11d   :  { %2103 = verf.f32 %v431_v44  ;;  %v432_v52 = vmul.f32 0.70710677, %v2533_v47  ;;  %v546_v53 = vpack.c.bf16 %v522_v46, %v521_v45  ;;  %v402_v36 = vmul.f32 0.5, %v2530_v31 }
 0x11e   :  { %v2094_v51 = vpop.eup %2093  ;;  %2105 = verf.f32 %v434_v49  ;;  %v545_v55 = vpack.c.bf16 %v520_v48, %v519_v38  ;;  %v400_v41 = vmul.f32 0.5, %v2533_v47 }
 0x11f   :  { %v2096_v50 = vpop.eup %2095  ;;  %v1848_v54 = vpop.f32.mrb[24].mxu0  ;;  %v493_v56 = vadd.f32 1.0, %v2094_v51  ;;  %2107 = verf.f32 %v432_v52 }
 0x120   :  { %v2538_v57 = vadd.f32 %v1848_v54, %v2469_v34  ;;  %v348_v58 = vpop.f32.mrb[25].mxu0  ;;  %v2098_v59 = vpop.eup %2097  ;;  %v491_v61 = vadd.f32 1.0, %v2096_v50  ;;  %1882 = vmatprep.mubr.bf16.mxu1 %v545_v55 }
 0x121   :  { %v2542_v63 = vadd.f32 %v2469_v34, %v348_v58  ;;  %v1849_v0 = vpop.f32.mrb[26].mxu0  ;;  %v2100_v2 = vpop.eup %2099  ;;  %v494_v7 = vadd.f32 1.0, %v2098_v59  ;;  %1883 = vmatmul.mubr.bf16.gmra.mrb[12].mxu1 %v546_v53  ;;  %v525_v14 = vmul.f32 %v493_v56, %v397_v60 }
 0x122   :  { %v437_v8 = vmul.f32 0.70710677, %v2538_v57  ;;  %v351_v9 = vpop.f32.mrb[27].mxu0  ;;  %v492_v12 = vadd.f32 1.0, %v2100_v2  ;;  %v360_v62 = vadd.f32 %v1849_v0, %v2469_v34  ;;  %v523_v16 = vmul.f32 %v491_v61, %v395_v3 }
 0x123   :  { %v435_v13 = vmul.f32 0.70710677, %v2542_v63  ;;  %v526_v15 = vmul.f32 %v494_v7, %v398_v4  ;;  %v352_v1 = vadd.f32 %v2469_v34, %v351_v9  ;;  %v405_v56 = vmul.f32 0.5, %v2538_v57 }
 0x124   :  { %2109 = verf.f32 %v437_v8  ;;  %v524_v18 = vmul.f32 %v492_v12, %v396_v10  ;;  %v438_v5 = vmul.f32 0.70710677, %v360_v62  ;;  %v406_v58 = vmul.f32 0.5, %v360_v62 }
 0x125   :  { %2111 = verf.f32 %v435_v13  ;;  %v436_v6 = vmul.f32 0.70710677, %v352_v1  ;;  %v548_v20 = vpack.c.bf16 %v526_v15, %v525_v14  ;;  %v403_v59 = vmul.f32 0.5, %v2542_v63 }
 0x126   :  { %v2102_v11 = vpop.eup %2101  ;;  %2113 = verf.f32 %v438_v5  ;;  %v547_v21 = vpack.c.bf16 %v524_v18, %v523_v16  ;;  %v404_v60 = vmul.f32 0.5, %v352_v1 }
 0x127   :  { %v2104_v17 = vpop.eup %2103  ;;  %v1852_v19 = vpop.f32.mrb[28].mxu0  ;;  %v497_v22 = vadd.f32 1.0, %v2102_v11  ;;  %2115 = verf.f32 %v436_v6 }
 0x128   :  { %v373_v23 = vadd.f32 %v1852_v19, %v2469_v34  ;;  %v364_v24 = vpop.f32.mrb[29].mxu0  ;;  %v2106_v25 = vpop.eup %2105  ;;  %v495_v28 = vadd.f32 1.0, %v2104_v17  ;;  %1886 = vmatprep.mubr.bf16.mxu1 %v547_v21  ;;  %v2050_v21 = vld [vmem:[%s2830_s3 + $0x68] sm:$0xff]  }
 0x129   :  { %v365_v29 = vadd.f32 %v2469_v34, %v364_v24  ;;  %v1853_v30 = vpop.f32.mrb[30].mxu0  ;;  %v2108_v33 = vpop.eup %2107  ;;  %v498_v37 = vadd.f32 1.0, %v2106_v25  ;;  %1887 = vmatmul.mubr.bf16.gmra.mrb[16].mxu1 %v548_v20  ;;  %v529_v44 = vmul.f32 %v497_v22, %v401_v27  ;;  %1912 = vmatprep.subr.bf16.mxu0 %v2050_v21  ;;  %v2051_v22 = vld [vmem:[%s2830_s3 + $0x70] sm:$0xff]   ;;  %v2568_v24 = vld [vmem:[#allocation2] sm:$0xff]   ;;  %v2571_v25 = vld [vmem:[#allocation2 + $0x8] sm:$0xff]  }
 0x12a   :  { %v441_v39 = vmul.f32 0.70710677, %v373_v23  ;;  %v367_v40 = vpop.f32.mrb[31].mxu0  ;;  %v496_v42 = vadd.f32 1.0, %v2108_v33  ;;  %v376_v26 = vadd.f32 %v1853_v30, %v2469_v34  ;;  %v527_v38 = vmul.f32 %v495_v28, %v399_v35  ;;  %1913 = vmatpush3.bf16.msra.mxu0 %v2050_v21  ;;  %1998 = vmatprep.subr.bf16.mxu1 %v2568_v24  ;;  %v2576_v27 = vld [vmem:[#allocation2 + $0x10] sm:$0xff]   ;;  %v2580_v28 = vld [vmem:[#allocation2 + $0x18] sm:$0xff]  }
 0x12b   :  { %v439_v43 = vmul.f32 0.70710677, %v365_v29  ;;  %v530_v45 = vmul.f32 %v498_v37, %v402_v36  ;;  %v368_v46 = vadd.f32 %v2469_v34, %v367_v40  ;;  %v409_v62 = vmul.f32 0.5, %v373_v23  ;;  %1914 = vmatprep.subr.bf16.mxu0 %v2051_v22  ;;  %v2052_v23 = vld [vmem:[%s2830_s3 + $0x78] sm:$0xff]   ;;  %2006 = vmatpush3.bf16.msra.mxu1 %v2568_v24 }
 0x12c   :  { %2117 = verf.f32 %v441_v39  ;;  %v528_v48 = vmul.f32 %v496_v42, %v400_v41  ;;  %v442_v32 = vmul.f32 0.70710677, %v376_v26  ;;  %v410_v15 = vmul.f32 0.5, %v376_v26  ;;  %1999 = vmatprep.subr.bf16.mxu1 %v2571_v25 }
 0x12d   :  { %2119 = verf.f32 %v439_v43  ;;  %v440_v49 = vmul.f32 0.70710677, %v368_v46  ;;  %v550_v51 = vpack.c.bf16 %v530_v45, %v529_v44  ;;  %v407_v63 = vmul.f32 0.5, %v365_v29  ;;  %v2588_v29 = vld [vmem:[%s2831_s4] ss:$0 sm:$0xff] }
 0x12e   :  { %v2110_v31 = vpop.eup %2109  ;;  %2121 = verf.f32 %v442_v32  ;;  %v549_v53 = vpack.c.bf16 %v528_v48, %v527_v38  ;;  %v408_v1 = vmul.f32 0.5, %v368_v46  ;;  %1915 = vmatpush3.bf16.msra.mxu0 %v2051_v22 }
 0x12f   :  { %v2112_v52 = vpop.eup %2111  ;;  %v501_v47 = vadd.f32 1.0, %v2110_v31  ;;  %2123 = verf.f32 %v440_v49  ;;  %1916 = vmatprep.subr.bf16.mxu0 %v2052_v23  ;;  %2007 = vmatpush3.bf16.msra.mxu1 %v2571_v25 }
 0x130   :  { %v2114_v50 = vpop.eup %2113  ;;  %v499_v54 = vadd.f32 1.0, %v2112_v52  ;;  %1890 = vmatprep.mubr.bf16.mxu1 %v549_v53  ;;  %2000 = vmatprep.subr.bf16.mxu1 %v2576_v27 }
 0x131   :  { %v2116_v55 = vpop.eup %2115  ;;  %v502_v34 = vadd.f32 1.0, %v2114_v50  ;;  %1891 = vmatmul.mubr.bf16.gmra.mrb[20].mxu1 %v550_v51  ;;  %v533_v0 = vmul.f32 %v501_v47, %v405_v56 }
 0x132   :  { %v500_v61 = vadd.f32 1.0, %v2116_v55  ;;  %v531_v3 = vmul.f32 %v499_v54, %v403_v59  ;;  %1917 = vmatpush3.bf16.msra.mxu0 %v2052_v23 }
 0x133   :  { %v534_v2 = vmul.f32 %v502_v34, %v406_v58  ;;  %1950 = vmatprep.subr.bf16.mxu0 %v2568_v24  ;;  %2008 = vmatpush3.bf16.msra.mxu1 %v2576_v27 }
 0x134   :  { %v532_v4 = vmul.f32 %v500_v61, %v404_v60  ;;  %2001 = vmatprep.subr.bf16.mxu1 %v2580_v28 }
 0x135   :  { %v552_v8 = vpack.c.bf16 %v534_v2, %v533_v0 }
 0x136   :  { %v2118_v7 = vpop.eup %2117  ;;  %v551_v10 = vpack.c.bf16 %v532_v4, %v531_v3 }
 0x137   :  { %v2120_v9 = vpop.eup %2119  ;;  %v505_v12 = vadd.f32 1.0, %v2118_v7  ;;  %2009 = vmatpush3.bf16.msra.mxu1 %v2580_v28 }
 0x138   :  { %v2122_v13 = vpop.eup %2121  ;;  %v503_v14 = vadd.f32 1.0, %v2120_v9  ;;  %1894 = vmatprep.mubr.bf16.mxu1 %v551_v10 }
 0x139   :  { %v2124_v57 = vpop.eup %2123  ;;  %v506_v16 = vadd.f32 1.0, %v2122_v13  ;;  %1895 = vmatmul.mubr.bf16.gmra.mrb[24].mxu1 %v552_v8  ;;  %v537_v5 = vmul.f32 %v505_v12, %v409_v62 }
 0x13a   :  { %v504_v18 = vadd.f32 1.0, %v2124_v57  ;;  %v535_v6 = vmul.f32 %v503_v14, %v407_v63 }
 0x13b   :  { %v538_v11 = vmul.f32 %v506_v16, %v410_v15 }
 0x13c   :  { %v536_v20 = vmul.f32 %v504_v18, %v408_v1 }
 0x13d   :  { %v554_v17 = vpack.c.bf16 %v538_v11, %v537_v5 }
 0x13e   :  { %v553_v19 = vpack.c.bf16 %v536_v20, %v535_v6 }
 0x140   :  { %1898 = vmatprep.mubr.bf16.mxu1 %v553_v19 }
 0x141   :  { %1899 = vmatmul.mubr.bf16.gmra.mrb[28].mxu1 %v554_v17 }
 0x1dc   :  { %v1872_v30 = vpop.f32.mrb[0].mxu1 }
 0x1dd   :  { %v669_v33 = vadd.f32 %v1872_v30, %v2588_v29  ;;  %v660_v35 = vpop.f32.mrb[1].mxu1 }
 0x1de   :  { %v661_v36 = vadd.f32 %v2588_v29, %v660_v35  ;;  %v1873_v37 = vpop.f32.mrb[2].mxu1 }
 0x1df   :  { %v821_v39 = vmul.f32 0.70710677, %v669_v33  ;;  %v672_v40 = vadd.f32 %v1873_v37, %v2588_v29  ;;  %v663_v41 = vpop.f32.mrb[3].mxu1  ;;  %v789_v2 = vmul.f32 0.5, %v669_v33 }
 0x1e0   :  { %v819_v42 = vmul.f32 0.70710677, %v661_v36  ;;  %v664_v43 = vadd.f32 %v2588_v29, %v663_v41  ;;  %v787_v9 = vmul.f32 0.5, %v661_v36 }
 0x1e1   :  { %2125 = verf.f32 %v821_v39  ;;  %v822_v26 = vmul.f32 0.70710677, %v672_v40  ;;  %v790_v3 = vmul.f32 0.5, %v672_v40 }
 0x1e2   :  { %2127 = verf.f32 %v819_v42  ;;  %v820_v44 = vmul.f32 0.70710677, %v664_v43  ;;  %v788_v10 = vmul.f32 0.5, %v664_v43 }
 0x1e3   :  { %2129 = verf.f32 %v822_v26 }
 0x1e4   :  { %2131 = verf.f32 %v820_v44  ;;  %v1876_v45 = vpop.f32.mrb[4].mxu1 }
 0x1e5   :  { %v685_v46 = vadd.f32 %v1876_v45, %v2588_v29  ;;  %v676_v38 = vpop.f32.mrb[5].mxu1 }
 0x1e6   :  { %v677_v48 = vadd.f32 %v2588_v29, %v676_v38  ;;  %v1877_v32 = vpop.f32.mrb[6].mxu1 }
 0x1e7   :  { %v825_v31 = vmul.f32 0.70710677, %v685_v46  ;;  %v688_v49 = vadd.f32 %v1877_v32, %v2588_v29  ;;  %v679_v51 = vpop.f32.mrb[7].mxu1  ;;  %v793_v37 = vmul.f32 0.5, %v685_v46 }
 0x1e8   :  { %v823_v52 = vmul.f32 0.70710677, %v677_v48  ;;  %v680_v53 = vadd.f32 %v2588_v29, %v679_v51  ;;  %v791_v43 = vmul.f32 0.5, %v677_v48 }
 0x1e9   :  { %2133 = verf.f32 %v825_v31  ;;  %v826_v47 = vmul.f32 0.70710677, %v688_v49  ;;  %v794_v39 = vmul.f32 0.5, %v688_v49 }
 0x1ea   :  { %2135 = verf.f32 %v823_v52  ;;  %v824_v50 = vmul.f32 0.70710677, %v680_v53  ;;  %v792_v26 = vmul.f32 0.5, %v680_v53 }
 0x1eb   :  { %v2126_v54 = vpop.eup %2125  ;;  %2137 = verf.f32 %v826_v47 }
 0x1ec   :  { %v2128_v55 = vpop.eup %2127  ;;  %v885_v56 = vadd.f32 1.0, %v2126_v54  ;;  %2139 = verf.f32 %v824_v50  ;;  %v1880_v58 = vpop.f32.mrb[8].mxu1 }
 0x1ed   :  { %v2130_v34 = vpop.eup %2129  ;;  %v883_v59 = vadd.f32 1.0, %v2128_v55  ;;  %v2599_v60 = vadd.f32 %v1880_v58, %v2588_v29  ;;  %v692_v61 = vpop.f32.mrb[9].mxu1 }
 0x1ee   :  { %v2132_v0 = vpop.eup %2131  ;;  %v886_v4 = vadd.f32 1.0, %v2130_v34  ;;  %v2602_v7 = vadd.f32 %v2588_v29, %v692_v61  ;;  %v1881_v8 = vpop.f32.mrb[10].mxu1  ;;  %v917_v57 = vmul.f32 %v885_v56, %v789_v2 }
 0x1ef   :  { %v884_v12 = vadd.f32 1.0, %v2132_v0  ;;  %v829_v13 = vmul.f32 0.70710677, %v2599_v60  ;;  %v695_v14 = vpop.f32.mrb[11].mxu1  ;;  %v2607_v16 = vadd.f32 %v1881_v8, %v2588_v29  ;;  %v915_v63 = vmul.f32 %v883_v59, %v787_v9 }
 0x1f0   :  { %v918_v62 = vmul.f32 %v886_v4, %v790_v3  ;;  %v827_v15 = vmul.f32 0.70710677, %v2602_v7  ;;  %v2610_v18 = vadd.f32 %v2588_v29, %v695_v14  ;;  %v797_v0 = vmul.f32 0.5, %v2599_v60 }
 0x1f1   :  { %v916_v1 = vmul.f32 %v884_v12, %v788_v10  ;;  %2141 = verf.f32 %v829_v13  ;;  %v830_v11 = vmul.f32 0.70710677, %v2607_v16  ;;  %v795_v8 = vmul.f32 0.5, %v2602_v7 }
 0x1f2   :  { %v948_v5 = vpack.c.bf16 %v918_v62, %v917_v57  ;;  %2143 = verf.f32 %v827_v15  ;;  %v828_v20 = vmul.f32 0.70710677, %v2610_v18  ;;  %v798_v9 = vmul.f32 0.5, %v2607_v16 }
 0x1f3   :  { %v2134_v6 = vpop.eup %2133  ;;  %v947_v17 = vpack.c.bf16 %v916_v1, %v915_v63  ;;  %2145 = verf.f32 %v830_v11  ;;  %v796_v14 = vmul.f32 0.5, %v2610_v18 }
 0x1f4   :  { %v2136_v19 = vpop.eup %2135  ;;  %v889_v21 = vadd.f32 1.0, %v2134_v6  ;;  %v1884_v22 = vpop.f32.mrb[12].mxu1  ;;  %2147 = verf.f32 %v828_v20 }
 0x1f5   :  { %v2138_v23 = vpop.eup %2137  ;;  %v887_v30 = vadd.f32 1.0, %v2136_v19  ;;  %v2615_v33 = vadd.f32 %v1884_v22, %v2588_v29  ;;  %v708_v35 = vpop.f32.mrb[13].mxu1  ;;  %1918 = vmatprep.mubr.bf16.mxu0 %v947_v17 }
 0x1f6   :  { %v2140_v36 = vpop.eup %2139  ;;  %v890_v40 = vadd.f32 1.0, %v2138_v23  ;;  %v2618_v41 = vadd.f32 %v2588_v29, %v708_v35  ;;  %v1885_v42 = vpop.f32.mrb[14].mxu1  ;;  %1919 = vmatmul.mubr.bf16.vlgmr.msra.gmra.mrb[32].mxu0 %v948_v5  ;;  %v921_v32 = vmul.f32 %v889_v21, %v793_v37 }
 0x1f7   :  { %v888_v44 = vadd.f32 1.0, %v2140_v36  ;;  %v833_v45 = vmul.f32 0.70710677, %v2615_v33  ;;  %v711_v38 = vpop.f32.mrb[15].mxu1  ;;  %1951 = vmatpush3.bf16.msra.mxu0 %v2568_v24  ;;  %v2624_v46 = vadd.f32 %v1885_v42, %v2588_v29  ;;  %v919_v49 = vmul.f32 %v887_v30, %v791_v43 }
 0x1f8   :  { %v922_v31 = vmul.f32 %v890_v40, %v794_v39  ;;  %v831_v51 = vmul.f32 0.70710677, %v2618_v41  ;;  %1952 = vmatprep.subr.bf16.mxu0 %v2571_v25  ;;  %v2628_v48 = vadd.f32 %v2588_v29, %v711_v38  ;;  %v801_v30 = vmul.f32 0.5, %v2615_v33 }
 0x1f9   :  { %v920_v52 = vmul.f32 %v888_v44, %v792_v26  ;;  %2149 = verf.f32 %v833_v45  ;;  %v834_v53 = vmul.f32 0.70710677, %v2624_v46  ;;  %v799_v39 = vmul.f32 0.5, %v2618_v41 }
 0x1fa   :  { %2151 = verf.f32 %v831_v51  ;;  %v950_v47 = vpack.c.bf16 %v922_v31, %v921_v32  ;;  %v832_v50 = vmul.f32 0.70710677, %v2628_v48  ;;  %v802_v40 = vmul.f32 0.5, %v2624_v46 }
 0x1fb   :  { %v2142_v24 = vpop.eup %2141  ;;  %v949_v54 = vpack.c.bf16 %v920_v52, %v919_v49  ;;  %1953 = vmatpush3.bf16.msra.mxu0 %v2571_v25  ;;  %2153 = verf.f32 %v834_v53  ;;  %v800_v44 = vmul.f32 0.5, %v2628_v48 }
 0x1fc   :  { %v2144_v55 = vpop.eup %2143  ;;  %v1888_v56 = vpop.f32.mrb[16].mxu1  ;;  %1954 = vmatprep.subr.bf16.mxu0 %v2576_v27  ;;  %v893_v58 = vadd.f32 1.0, %v2142_v24  ;;  %2155 = verf.f32 %v832_v50 }
 0x1fd   :  { %v2635_v34 = vadd.f32 %v1888_v56, %v2588_v29  ;;  %v724_v59 = vpop.f32.mrb[17].mxu1  ;;  %1922 = vmatprep.mubr.bf16.mxu0 %v949_v54  ;;  %v2146_v61 = vpop.eup %2145  ;;  %v891_v2 = vadd.f32 1.0, %v2144_v55 }
 0x1fe   :  { %v2639_v3 = vadd.f32 %v2588_v29, %v724_v59  ;;  %v1889_v25 = vpop.f32.mrb[18].mxu1  ;;  %1923 = vmatmul.mubr.bf16.gmra.mrb[36].mxu0 %v950_v47  ;;  %v2148_v4 = vpop.eup %2147  ;;  %v894_v10 = vadd.f32 1.0, %v2146_v61  ;;  %v925_v15 = vmul.f32 %v893_v58, %v797_v0 }
 0x1ff   :  { %v837_v12 = vmul.f32 0.70710677, %v2635_v34  ;;  %v727_v13 = vpop.f32.mrb[19].mxu1  ;;  %1955 = vmatpush3.bf16.msra.mxu0 %v2576_v27  ;;  %v892_v60 = vadd.f32 1.0, %v2148_v4  ;;  %v2648_v62 = vadd.f32 %v1889_v25, %v2588_v29  ;;  %v923_v63 = vmul.f32 %v891_v2, %v795_v8 }
 0x200   :  { %v835_v57 = vmul.f32 0.70710677, %v2639_v3  ;;  %1956 = vmatprep.subr.bf16.mxu0 %v2580_v28  ;;  %v926_v7 = vmul.f32 %v894_v10, %v798_v9  ;;  %v2652_v16 = vadd.f32 %v2588_v29, %v727_v13  ;;  %v805_v59 = vmul.f32 0.5, %v2635_v34 }
 0x201   :  { %2157 = verf.f32 %v837_v12  ;;  %v924_v1 = vmul.f32 %v892_v60, %v796_v14  ;;  %v838_v27 = vmul.f32 0.70710677, %v2648_v62  ;;  %v803_v4 = vmul.f32 0.5, %v2639_v3 }
 0x202   :  { %2159 = verf.f32 %v835_v57  ;;  %v836_v5 = vmul.f32 0.70710677, %v2652_v16  ;;  %v952_v11 = vpack.c.bf16 %v926_v7, %v925_v15  ;;  %v806_v8 = vmul.f32 0.5, %v2648_v62 }
 0x203   :  { %v2150_v18 = vpop.eup %2149  ;;  %1957 = vmatpush3.bf16.msra.mxu0 %v2580_v28  ;;  %2161 = verf.f32 %v838_v27  ;;  %v951_v17 = vpack.c.bf16 %v924_v1, %v923_v63  ;;  %v804_v13 = vmul.f32 0.5, %v2652_v16 }
 0x204   :  { %v2152_v6 = vpop.eup %2151  ;;  %v1892_v20 = vpop.f32.mrb[20].mxu1  ;;  %v897_v19 = vadd.f32 1.0, %v2150_v18  ;;  %2163 = verf.f32 %v836_v5 }
 0x205   :  { %v2658_v21 = vadd.f32 %v1892_v20, %v2588_v29  ;;  %v740_v22 = vpop.f32.mrb[21].mxu1  ;;  %v2154_v23 = vpop.eup %2153  ;;  %v895_v35 = vadd.f32 1.0, %v2152_v6  ;;  %1926 = vmatprep.mubr.bf16.mxu0 %v951_v17 }
 0x206   :  { %v2662_v36 = vadd.f32 %v2588_v29, %v740_v22  ;;  %v1893_v37 = vpop.f32.mrb[22].mxu1  ;;  %v2156_v28 = vpop.eup %2155  ;;  %v898_v42 = vadd.f32 1.0, %v2154_v23  ;;  %1927 = vmatmul.mubr.bf16.gmra.mrb[40].mxu0 %v952_v11  ;;  %v929_v32 = vmul.f32 %v897_v19, %v801_v30 }
 0x207   :  { %v841_v43 = vmul.f32 0.70710677, %v2658_v21  ;;  %v743_v26 = vpop.f32.mrb[23].mxu1  ;;  %v896_v45 = vadd.f32 1.0, %v2156_v28  ;;  %v2670_v38 = vadd.f32 %v1893_v37, %v2588_v29  ;;  %v927_v51 = vmul.f32 %v895_v35, %v799_v39 }
 0x208   :  { %v839_v33 = vmul.f32 0.70710677, %v2662_v36  ;;  %v930_v31 = vmul.f32 %v898_v42, %v802_v40  ;;  %v2673_v41 = vadd.f32 %v2588_v29, %v743_v26  ;;  %v809_v22 = vmul.f32 0.5, %v2658_v21 }
 0x209   :  { %2165 = verf.f32 %v841_v43  ;;  %v928_v46 = vmul.f32 %v896_v45, %v800_v44  ;;  %v842_v49 = vmul.f32 0.70710677, %v2670_v38  ;;  %v807_v28 = vmul.f32 0.5, %v2662_v36 }
 0x20a   :  { %2167 = verf.f32 %v839_v33  ;;  %v840_v48 = vmul.f32 0.70710677, %v2673_v41  ;;  %v954_v53 = vpack.c.bf16 %v930_v31, %v929_v32  ;;  %v810_v39 = vmul.f32 0.5, %v2670_v38 }
 0x20b   :  { %v2158_v52 = vpop.eup %2157  ;;  %2169 = verf.f32 %v842_v49  ;;  %v953_v50 = vpack.c.bf16 %v928_v46, %v927_v51  ;;  %v808_v26 = vmul.f32 0.5, %v2673_v41 }
 0x20c   :  { %v2160_v47 = vpop.eup %2159  ;;  %v1896_v24 = vpop.f32.mrb[24].mxu1  ;;  %v901_v54 = vadd.f32 1.0, %v2158_v52  ;;  %2171 = verf.f32 %v840_v48 }
 0x20d   :  { %v2678_v55 = vadd.f32 %v1896_v24, %v2588_v29  ;;  %v756_v56 = vpop.f32.mrb[25].mxu1  ;;  %v2162_v58 = vpop.eup %2161  ;;  %v899_v61 = vadd.f32 1.0, %v2160_v47  ;;  %1930 = vmatprep.mubr.bf16.mxu0 %v953_v50 }
 0x20e   :  { %v2682_v0 = vadd.f32 %v2588_v29, %v756_v56  ;;  %v1897_v2 = vpop.f32.mrb[26].mxu1  ;;  %v2164_v25 = vpop.eup %2163  ;;  %v902_v9 = vadd.f32 1.0, %v2162_v58  ;;  %1931 = vmatmul.mubr.bf16.gmra.mrb[44].mxu0 %v954_v53  ;;  %v933_v57 = vmul.f32 %v901_v54, %v805_v59 }
 0x20f   :  { %v845_v10 = vmul.f32 0.70710677, %v2678_v55  ;;  %v759_v12 = vpop.f32.mrb[27].mxu1  ;;  %v900_v14 = vadd.f32 1.0, %v2164_v25  ;;  %v768_v60 = vadd.f32 %v1897_v2, %v2588_v29  ;;  %v931_v3 = vmul.f32 %v899_v61, %v803_v4 }
 0x210   :  { %v843_v34 = vmul.f32 0.70710677, %v2682_v0  ;;  %v934_v15 = vmul.f32 %v902_v9, %v806_v8  ;;  %v760_v7 = vadd.f32 %v2588_v29, %v759_v12  ;;  %v813_v54 = vmul.f32 0.5, %v2678_v55 }
 0x211   :  { %2173 = verf.f32 %v845_v10  ;;  %v932_v63 = vmul.f32 %v900_v14, %v804_v13  ;;  %v846_v62 = vmul.f32 0.70710677, %v768_v60  ;;  %v814_v56 = vmul.f32 0.5, %v768_v60 }
 0x212   :  { %2175 = verf.f32 %v843_v34  ;;  %v844_v27 = vmul.f32 0.70710677, %v760_v7  ;;  %v956_v18 = vpack.c.bf16 %v934_v15, %v933_v57  ;;  %v811_v58 = vmul.f32 0.5, %v2682_v0 }
 0x213   :  { %v2166_v1 = vpop.eup %2165  ;;  %2177 = verf.f32 %v846_v62  ;;  %v955_v11 = vpack.c.bf16 %v932_v63, %v931_v3  ;;  %v812_v59 = vmul.f32 0.5, %v760_v7 }
 0x214   :  { %v2168_v5 = vpop.eup %2167  ;;  %v1900_v16 = vpop.f32.mrb[28].mxu1  ;;  %v905_v6 = vadd.f32 1.0, %v2166_v1  ;;  %2179 = verf.f32 %v844_v27 }
 0x215   :  { %v781_v20 = vadd.f32 %v1900_v16, %v2588_v29  ;;  %v772_v17 = vpop.f32.mrb[29].mxu1  ;;  %v2170_v19 = vpop.eup %2169  ;;  %v903_v23 = vadd.f32 1.0, %v2168_v5  ;;  %1934 = vmatprep.mubr.bf16.mxu0 %v955_v11  ;;  %v2057_v11 = vld [vmem:[#allocation2 + $0x20] sm:$0xff]  }
 0x216   :  { %v773_v30 = vadd.f32 %v2588_v29, %v772_v17  ;;  %v1901_v35 = vpop.f32.mrb[30].mxu1  ;;  %v2172_v37 = vpop.eup %2171  ;;  %v906_v40 = vadd.f32 1.0, %v2170_v19  ;;  %1935 = vmatmul.mubr.bf16.gmra.mrb[48].mxu0 %v956_v18  ;;  %v937_v33 = vmul.f32 %v905_v6, %v809_v22  ;;  %2002 = vmatprep.subr.bf16.mxu1 %v2057_v11  ;;  %v2058_v6 = vld [vmem:[#allocation2 + $0x28] sm:$0xff]   ;;  %v2060_v17 = vld [vmem:[#allocation2 + $0x38] sm:$0xff]   ;;  %v2704_v19 = vld [vmem:[%s2831_s4 + $0x1] ss:$0 sm:$0xff] }
 0x217   :  { %v849_v42 = vmul.f32 0.70710677, %v781_v20  ;;  %v775_v43 = vpop.f32.mrb[31].mxu1  ;;  %v904_v44 = vadd.f32 1.0, %v2172_v37  ;;  %v784_v21 = vadd.f32 %v1901_v35, %v2588_v29  ;;  %v935_v51 = vmul.f32 %v903_v23, %v807_v28  ;;  %1958 = vmatprep.subr.bf16.mxu0 %v2057_v11  ;;  %2010 = vmatpush3.bf16.msra.mxu1 %v2057_v11 }
 0x218   :  { %v847_v45 = vmul.f32 0.70710677, %v773_v30  ;;  %v938_v32 = vmul.f32 %v906_v40, %v810_v39  ;;  %v776_v31 = vadd.f32 %v2588_v29, %v775_v43  ;;  %v817_v60 = vmul.f32 0.5, %v781_v20  ;;  %1959 = vmatpush3.bf16.msra.mxu0 %v2057_v11  ;;  %2003 = vmatprep.subr.bf16.mxu1 %v2058_v6  ;;  %v2059_v20 = vld [vmem:[#allocation2 + $0x30] sm:$0xff]  }
 0x219   :  { %2181 = verf.f32 %v849_v42  ;;  %v936_v46 = vmul.f32 %v904_v44, %v808_v26  ;;  %v850_v36 = vmul.f32 0.70710677, %v784_v21  ;;  %v818_v15 = vmul.f32 0.5, %v784_v21  ;;  %1960 = vmatprep.subr.bf16.mxu0 %v2058_v6 }
 0x21a   :  { %2183 = verf.f32 %v847_v45  ;;  %v848_v49 = vmul.f32 0.70710677, %v776_v31  ;;  %v958_v52 = vpack.c.bf16 %v938_v32, %v937_v33  ;;  %v815_v0 = vmul.f32 0.5, %v773_v30 }
 0x21b   :  { %v2174_v38 = vpop.eup %2173  ;;  %2185 = verf.f32 %v850_v36  ;;  %v957_v53 = vpack.c.bf16 %v936_v46, %v935_v51  ;;  %v816_v7 = vmul.f32 0.5, %v776_v31  ;;  %2011 = vmatpush3.bf16.msra.mxu1 %v2058_v6 }
 0x21c   :  { %v2176_v48 = vpop.eup %2175  ;;  %v909_v41 = vadd.f32 1.0, %v2174_v38  ;;  %2187 = verf.f32 %v848_v49  ;;  %1961 = vmatpush3.bf16.msra.mxu0 %v2058_v6  ;;  %2004 = vmatprep.subr.bf16.mxu1 %v2059_v20 }
 0x21d   :  { %v2178_v47 = vpop.eup %2177  ;;  %v907_v24 = vadd.f32 1.0, %v2176_v48  ;;  %1938 = vmatprep.mubr.bf16.mxu0 %v957_v53  ;;  %1962 = vmatprep.subr.bf16.mxu0 %v2059_v20 }
 0x21e   :  { %v2180_v50 = vpop.eup %2179  ;;  %v910_v29 = vadd.f32 1.0, %v2178_v47  ;;  %1939 = vmatmul.mubr.bf16.gmra.mrb[52].mxu0 %v958_v52  ;;  %v941_v2 = vmul.f32 %v909_v41, %v813_v54 }
 0x21f   :  { %v908_v61 = vadd.f32 1.0, %v2180_v50  ;;  %v939_v4 = vmul.f32 %v907_v24, %v811_v58  ;;  %2012 = vmatpush3.bf16.msra.mxu1 %v2059_v20 }
 0x220   :  { %v942_v25 = vmul.f32 %v910_v29, %v814_v56  ;;  %1963 = vmatpush3.bf16.msra.mxu0 %v2059_v20  ;;  %2005 = vmatprep.subr.bf16.mxu1 %v2060_v17 }
 0x221   :  { %v940_v8 = vmul.f32 %v908_v61, %v812_v59  ;;  %1964 = vmatprep.subr.bf16.mxu0 %v2060_v17 }
 0x222   :  { %v960_v10 = vpack.c.bf16 %v942_v25, %v941_v2 }
 0x223   :  { %v2182_v9 = vpop.eup %2181  ;;  %v959_v13 = vpack.c.bf16 %v940_v8, %v939_v4  ;;  %2013 = vmatpush3.bf16.msra.mxu1 %v2060_v17 }
 0x224   :  { %v2184_v12 = vpop.eup %2183  ;;  %v913_v14 = vadd.f32 1.0, %v2182_v9  ;;  %1965 = vmatpush3.bf16.msra.mxu0 %v2060_v17 }
 0x225   :  { %v2186_v34 = vpop.eup %2185  ;;  %v911_v57 = vadd.f32 1.0, %v2184_v12  ;;  %1942 = vmatprep.mubr.bf16.mxu0 %v959_v13 }
 0x226   :  { %v2188_v55 = vpop.eup %2187  ;;  %v914_v3 = vadd.f32 1.0, %v2186_v34  ;;  %1943 = vmatmul.mubr.bf16.gmra.mrb[56].mxu0 %v960_v10  ;;  %v945_v62 = vmul.f32 %v913_v14, %v817_v60 }
 0x227   :  { %v912_v63 = vadd.f32 1.0, %v2188_v55  ;;  %v943_v27 = vmul.f32 %v911_v57, %v815_v0 }
 0x228   :  { %v946_v1 = vmul.f32 %v914_v3, %v818_v15 }
 0x229   :  { %v944_v18 = vmul.f32 %v912_v63, %v816_v7 }
 0x22a   :  { %v962_v5 = vpack.c.bf16 %v946_v1, %v945_v62 }
 0x22b   :  { %v961_v16 = vpack.c.bf16 %v944_v18, %v943_v27 }
 0x22d   :  { %1946 = vmatprep.mubr.bf16.mxu0 %v961_v16 }
 0x22e   :  { %1947 = vmatmul.mubr.bf16.gmra.mrb[60].mxu0 %v962_v5 }
 0x2c9   :  { %v1920_v22 = vpop.f32.mrb[32].mxu0 }
 0x2ca   :  { %v1079_v23 = vadd.f32 %v1920_v22, %v2704_v19  ;;  %v1070_v30 = vpop.f32.mrb[33].mxu0 }
 0x2cb   :  { %v1071_v35 = vadd.f32 %v2704_v19, %v1070_v30  ;;  %v1921_v37 = vpop.f32.mrb[34].mxu0 }
 0x2cc   :  { %v1231_v28 = vmul.f32 0.70710677, %v1079_v23  ;;  %v1082_v39 = vadd.f32 %v1921_v37, %v2704_v19  ;;  %v1073_v40 = vpop.f32.mrb[35].mxu0  ;;  %v1199_v29 = vmul.f32 0.5, %v1079_v23 }
 0x2cd   :  { %v1229_v42 = vmul.f32 0.70710677, %v1071_v35  ;;  %v1074_v43 = vadd.f32 %v2704_v19, %v1073_v40  ;;  %v1197_v25 = vmul.f32 0.5, %v1071_v35 }
 0x2ce   :  { %2189 = verf.f32 %v1231_v28  ;;  %v1232_v26 = vmul.f32 0.70710677, %v1082_v39  ;;  %v1200_v58 = vmul.f32 0.5, %v1082_v39 }
 0x2cf   :  { %2191 = verf.f32 %v1229_v42  ;;  %v1230_v44 = vmul.f32 0.70710677, %v1074_v43  ;;  %v1198_v4 = vmul.f32 0.5, %v1074_v43 }
 0x2d0   :  { %2193 = verf.f32 %v1232_v26 }
 0x2d1   :  { %2195 = verf.f32 %v1230_v44  ;;  %v1924_v45 = vpop.f32.mrb[36].mxu0 }
 0x2d2   :  { %v1095_v21 = vadd.f32 %v1924_v45, %v2704_v19  ;;  %v1086_v33 = vpop.f32.mrb[37].mxu0 }
 0x2d3   :  { %v1087_v32 = vadd.f32 %v2704_v19, %v1086_v33  ;;  %v1925_v31 = vpop.f32.mrb[38].mxu0 }
 0x2d4   :  { %v1235_v51 = vmul.f32 0.70710677, %v1095_v21  ;;  %v1098_v46 = vadd.f32 %v1925_v31, %v2704_v19  ;;  %v1089_v36 = vpop.f32.mrb[39].mxu0  ;;  %v1203_v20 = vmul.f32 0.5, %v1095_v21 }
 0x2d5   :  { %v1233_v38 = vmul.f32 0.70710677, %v1087_v32  ;;  %v1090_v49 = vadd.f32 %v2704_v19, %v1089_v36  ;;  %v1201_v35 = vmul.f32 0.5, %v1087_v32 }
 0x2d6   :  { %2197 = verf.f32 %v1235_v51  ;;  %v1236_v52 = vmul.f32 0.70710677, %v1098_v46  ;;  %v1204_v17 = vmul.f32 0.5, %v1098_v46 }
 0x2d7   :  { %2199 = verf.f32 %v1233_v38  ;;  %v1234_v48 = vmul.f32 0.70710677, %v1090_v49  ;;  %v1202_v37 = vmul.f32 0.5, %v1090_v49 }
 0x2d8   :  { %v2190_v53 = vpop.eup %2189  ;;  %2201 = verf.f32 %v1236_v52 }
 0x2d9   :  { %v2192_v41 = vpop.eup %2191  ;;  %v1295_v47 = vadd.f32 1.0, %v2190_v53  ;;  %2203 = verf.f32 %v1234_v48  ;;  %v1928_v54 = vpop.f32.mrb[40].mxu0 }
 0x2da   :  { %v2194_v24 = vpop.eup %2193  ;;  %v1293_v50 = vadd.f32 1.0, %v2192_v41  ;;  %v2715_v61 = vadd.f32 %v1928_v54, %v2704_v19  ;;  %v1102_v2 = vpop.f32.mrb[41].mxu0 }
 0x2db   :  { %v2196_v56 = vpop.eup %2195  ;;  %v1296_v59 = vadd.f32 1.0, %v2194_v24  ;;  %v2718_v9 = vadd.f32 %v2704_v19, %v1102_v2  ;;  %v1929_v10 = vpop.f32.mrb[42].mxu0  ;;  %v1327_v12 = vmul.f32 %v1295_v47, %v1199_v29 }
 0x2dc   :  { %v1294_v8 = vadd.f32 1.0, %v2196_v56  ;;  %v1239_v14 = vmul.f32 0.70710677, %v2715_v61  ;;  %v1114_v34 = vadd.f32 %v1929_v10, %v2704_v19  ;;  %v1105_v57 = vpop.f32.mrb[43].mxu0  ;;  %v1325_v55 = vmul.f32 %v1293_v50, %v1197_v25 }
 0x2dd   :  { %v1328_v13 = vmul.f32 %v1296_v59, %v1200_v58  ;;  %v1237_v15 = vmul.f32 0.70710677, %v2718_v9  ;;  %v1106_v3 = vadd.f32 %v2704_v19, %v1105_v57  ;;  %v1207_v56 = vmul.f32 0.5, %v2715_v61 }
 0x2de   :  { %v1326_v60 = vmul.f32 %v1294_v8, %v1198_v4  ;;  %2205 = verf.f32 %v1239_v14  ;;  %v1240_v7 = vmul.f32 0.70710677, %v1114_v34  ;;  %v1208_v29 = vmul.f32 0.5, %v1114_v34 }
 0x2df   :  { %v1358_v0 = vpack.c.bf16 %v1328_v13, %v1327_v12  ;;  %2207 = verf.f32 %v1237_v15  ;;  %v1238_v62 = vmul.f32 0.70710677, %v1106_v3  ;;  %v1205_v25 = vmul.f32 0.5, %v2718_v9 }
 0x2e0   :  { %v2198_v63 = vpop.eup %2197  ;;  %v1357_v1 = vpack.c.bf16 %v1326_v60, %v1325_v55  ;;  %2209 = verf.f32 %v1240_v7  ;;  %v1206_v4 = vmul.f32 0.5, %v1106_v3 }
 0x2e1   :  { %v2200_v27 = vpop.eup %2199  ;;  %v1299_v18 = vadd.f32 1.0, %v2198_v63  ;;  %2211 = verf.f32 %v1238_v62  ;;  %v1932_v11 = vpop.f32.mrb[44].mxu0 }
 0x2e2   :  { %v2202_v5 = vpop.eup %2201  ;;  %v1297_v16 = vadd.f32 1.0, %v2200_v27  ;;  %1966 = vmatprep.mubr.bf16.mxu0 %v1357_v1  ;;  %v2725_v23 = vadd.f32 %v1932_v11, %v2704_v19  ;;  %v1118_v30 = vpop.f32.mrb[45].mxu0 }
 0x2e3   :  { %v2204_v6 = vpop.eup %2203  ;;  %v1300_v22 = vadd.f32 1.0, %v2202_v5  ;;  %1967 = vmatmul.mubr.bf16.vlgmr.msra.gmra.mrb[64].mxu0 %v1358_v0  ;;  %v2728_v39 = vadd.f32 %v2704_v19, %v1118_v30  ;;  %v1933_v40 = vpop.f32.mrb[46].mxu0  ;;  %v1331_v42 = vmul.f32 %v1299_v18, %v1203_v20 }
 0x2e4   :  { %v1298_v28 = vadd.f32 1.0, %v2204_v6  ;;  %v1243_v26 = vmul.f32 0.70710677, %v2725_v23  ;;  %v1130_v44 = vadd.f32 %v1933_v40, %v2704_v19  ;;  %v1121_v45 = vpop.f32.mrb[47].mxu0  ;;  %v1329_v21 = vmul.f32 %v1297_v16, %v1201_v35 }
 0x2e5   :  { %v1332_v43 = vmul.f32 %v1300_v22, %v1204_v17  ;;  %v1241_v31 = vmul.f32 0.70710677, %v2728_v39  ;;  %v1122_v51 = vadd.f32 %v2704_v19, %v1121_v45  ;;  %v1211_v6 = vmul.f32 0.5, %v2725_v23 }
 0x2e6   :  { %v1330_v33 = vmul.f32 %v1298_v28, %v1202_v37  ;;  %2213 = verf.f32 %v1243_v26  ;;  %v1244_v46 = vmul.f32 0.70710677, %v1130_v44  ;;  %v1212_v20 = vmul.f32 0.5, %v1130_v44 }
 0x2e7   :  { %v1360_v32 = vpack.c.bf16 %v1332_v43, %v1331_v42  ;;  %2215 = verf.f32 %v1241_v31  ;;  %v1242_v36 = vmul.f32 0.70710677, %v1122_v51  ;;  %v1209_v35 = vmul.f32 0.5, %v2728_v39 }
 0x2e8   :  { %v1359_v38 = vpack.c.bf16 %v1330_v33, %v1329_v21  ;;  %v2206_v49 = vpop.eup %2205  ;;  %2217 = verf.f32 %v1244_v46  ;;  %v1210_v37 = vmul.f32 0.5, %v1122_v51 }
 0x2e9   :  { %v2208_v52 = vpop.eup %2207  ;;  %v1303_v48 = vadd.f32 1.0, %v2206_v49  ;;  %2219 = verf.f32 %v1242_v36  ;;  %v1936_v53 = vpop.f32.mrb[48].mxu0 }
 0x2ea   :  { %1970 = vmatprep.mubr.bf16.mxu1 %v1359_v38  ;;  %v2210_v41 = vpop.eup %2209  ;;  %v1301_v47 = vadd.f32 1.0, %v2208_v52  ;;  %v2735_v24 = vadd.f32 %v1936_v53, %v2704_v19  ;;  %v1134_v50 = vpop.f32.mrb[49].mxu0 }
 0x2eb   :  { %1971 = vmatmul.mubr.bf16.vlgmr.msra.gmra.mrb[32].mxu1 %v1360_v32  ;;  %v2212_v54 = vpop.eup %2211  ;;  %v1304_v58 = vadd.f32 1.0, %v2210_v41  ;;  %v2739_v59 = vadd.f32 %v2704_v19, %v1134_v50  ;;  %v1937_v2 = vpop.f32.mrb[50].mxu0  ;;  %v1335_v13 = vmul.f32 %v1303_v48, %v1207_v56 }
 0x2ec   :  { %v1302_v8 = vadd.f32 1.0, %v2212_v54  ;;  %v1247_v10 = vmul.f32 0.70710677, %v2735_v24  ;;  %v1137_v12 = vpop.f32.mrb[51].mxu0  ;;  %v1146_v55 = vadd.f32 %v1937_v2, %v2704_v19  ;;  %v1333_v61 = vmul.f32 %v1301_v47, %v1205_v25 }
 0x2ed   :  { %v1336_v14 = vmul.f32 %v1304_v58, %v1208_v29  ;;  %v1245_v57 = vmul.f32 0.70710677, %v2739_v59  ;;  %v1138_v60 = vadd.f32 %v2704_v19, %v1137_v12  ;;  %v1215_v41 = vmul.f32 0.5, %v2735_v24 }
 0x2ee   :  { %v1334_v34 = vmul.f32 %v1302_v8, %v1206_v4  ;;  %2221 = verf.f32 %v1247_v10  ;;  %v1248_v15 = vmul.f32 0.70710677, %v1146_v55  ;;  %v1213_v29 = vmul.f32 0.5, %v2739_v59 }
 0x2ef   :  { %2223 = verf.f32 %v1245_v57  ;;  %v1362_v0 = vpack.c.bf16 %v1336_v14, %v1335_v13  ;;  %v1246_v3 = vmul.f32 0.70710677, %v1138_v60  ;;  %v1216_v58 = vmul.f32 0.5, %v1146_v55 }
 0x2f0   :  { %v2214_v9 = vpop.eup %2213  ;;  %v1361_v7 = vpack.c.bf16 %v1334_v34, %v1333_v61  ;;  %2225 = verf.f32 %v1248_v15  ;;  %v1214_v8 = vmul.f32 0.5, %v1138_v60 }
 0x2f1   :  { %v2216_v63 = vpop.eup %2215  ;;  %v1307_v62 = vadd.f32 1.0, %v2214_v9  ;;  %v1940_v1 = vpop.f32.mrb[52].mxu0  ;;  %2227 = verf.f32 %v1246_v3 }
 0x2f2   :  { %v2218_v27 = vpop.eup %2217  ;;  %v1305_v18 = vadd.f32 1.0, %v2216_v63  ;;  %v2747_v5 = vadd.f32 %v1940_v1, %v2704_v19  ;;  %v1150_v16 = vpop.f32.mrb[53].mxu0  ;;  %1974 = vmatprep.mubr.bf16.mxu1 %v1361_v7 }
 0x2f3   :  { %v2220_v11 = vpop.eup %2219  ;;  %v1308_v17 = vadd.f32 1.0, %v2218_v27  ;;  %v2751_v22 = vadd.f32 %v2704_v19, %v1150_v16  ;;  %v1941_v30 = vpop.f32.mrb[54].mxu0  ;;  %1975 = vmatmul.mubr.bf16.gmra.mrb[36].mxu1 %v1362_v0  ;;  %v1339_v43 = vmul.f32 %v1307_v62, %v1211_v6 }
 0x2f4   :  { %v1306_v28 = vadd.f32 1.0, %v2220_v11  ;;  %v1251_v40 = vmul.f32 0.70710677, %v2747_v5  ;;  %v1153_v42 = vpop.f32.mrb[55].mxu0  ;;  %v1162_v23 = vadd.f32 %v1941_v30, %v2704_v19  ;;  %v1337_v44 = vmul.f32 %v1305_v18, %v1209_v35 }
 0x2f5   :  { %v1340_v26 = vmul.f32 %v1308_v17, %v1212_v20  ;;  %v1249_v45 = vmul.f32 0.70710677, %v2751_v22  ;;  %v1154_v33 = vadd.f32 %v2704_v19, %v1153_v42  ;;  %v1219_v27 = vmul.f32 0.5, %v2747_v5 }
 0x2f6   :  { %v1338_v21 = vmul.f32 %v1306_v28, %v1210_v37  ;;  %2229 = verf.f32 %v1251_v40  ;;  %v1252_v31 = vmul.f32 0.70710677, %v1162_v23  ;;  %v1217_v20 = vmul.f32 0.5, %v2751_v22 }
 0x2f7   :  { %2231 = verf.f32 %v1249_v45  ;;  %v1364_v32 = vpack.c.bf16 %v1340_v26, %v1339_v43  ;;  %v1250_v51 = vmul.f32 0.70710677, %v1154_v33  ;;  %v1220_v17 = vmul.f32 0.5, %v1162_v23 }
 0x2f8   :  { %v2222_v39 = vpop.eup %2221  ;;  %v1363_v46 = vpack.c.bf16 %v1338_v21, %v1337_v44  ;;  %2233 = verf.f32 %v1252_v31  ;;  %v1218_v28 = vmul.f32 0.5, %v1154_v33 }
 0x2f9   :  { %v2224_v36 = vpop.eup %2223  ;;  %v1944_v38 = vpop.f32.mrb[56].mxu0  ;;  %v1311_v49 = vadd.f32 1.0, %v2222_v39  ;;  %2235 = verf.f32 %v1250_v51 }
 0x2fa   :  { %v2759_v52 = vadd.f32 %v1944_v38, %v2704_v19  ;;  %v1166_v48 = vpop.f32.mrb[57].mxu0  ;;  %1978 = vmatprep.mubr.bf16.mxu1 %v1363_v46  ;;  %v2226_v53 = vpop.eup %2225  ;;  %v1309_v47 = vadd.f32 1.0, %v2224_v36 }
 0x2fb   :  { %v2763_v50 = vadd.f32 %v2704_v19, %v1166_v48  ;;  %v1945_v54 = vpop.f32.mrb[58].mxu0  ;;  %1979 = vmatmul.mubr.bf16.gmra.mrb[40].mxu1 %v1364_v32  ;;  %v2228_v56 = vpop.eup %2227  ;;  %v1312_v2 = vadd.f32 1.0, %v2226_v53  ;;  %v1343_v13 = vmul.f32 %v1311_v49, %v1215_v41 }
 0x2fc   :  { %v1255_v25 = vmul.f32 0.70710677, %v2759_v52  ;;  %v1169_v4 = vpop.f32.mrb[59].mxu0  ;;  %v1310_v10 = vadd.f32 1.0, %v2228_v56  ;;  %v1178_v24 = vadd.f32 %v1945_v54, %v2704_v19  ;;  %v1341_v61 = vmul.f32 %v1309_v47, %v1213_v29 }
 0x2fd   :  { %v1253_v12 = vmul.f32 0.70710677, %v2763_v50  ;;  %v1344_v14 = vmul.f32 %v1312_v2, %v1216_v58  ;;  %v1170_v57 = vadd.f32 %v2704_v19, %v1169_v4  ;;  %v1223_v49 = vmul.f32 0.5, %v2759_v52 }
 0x2fe   :  { %2237 = verf.f32 %v1255_v25  ;;  %v1342_v34 = vmul.f32 %v1310_v10, %v1214_v8  ;;  %v1256_v59 = vmul.f32 0.70710677, %v1178_v24  ;;  %v1224_v48 = vmul.f32 0.5, %v1178_v24 }
 0x2ff   :  { %2239 = verf.f32 %v1253_v12  ;;  %v1254_v15 = vmul.f32 0.70710677, %v1170_v57  ;;  %v1366_v0 = vpack.c.bf16 %v1344_v14, %v1343_v13  ;;  %v1221_v53 = vmul.f32 0.5, %v2763_v50 }
 0x300   :  { %v2230_v55 = vpop.eup %2229  ;;  %2241 = verf.f32 %v1256_v59  ;;  %v1365_v3 = vpack.c.bf16 %v1342_v34, %v1341_v61  ;;  %v1222_v41 = vmul.f32 0.5, %v1170_v57 }
 0x301   :  { %v2232_v9 = vpop.eup %2231  ;;  %v1948_v60 = vpop.f32.mrb[60].mxu0  ;;  %v1315_v7 = vadd.f32 1.0, %v2230_v55  ;;  %2243 = verf.f32 %v1254_v15 }
 0x302   :  { %v1191_v63 = vadd.f32 %v1948_v60, %v2704_v19  ;;  %v1182_v62 = vpop.f32.mrb[61].mxu0  ;;  %v2234_v1 = vpop.eup %2233  ;;  %v1313_v18 = vadd.f32 1.0, %v2232_v9  ;;  %1982 = vmatprep.mubr.bf16.mxu1 %v1365_v3  ;;  %v2781_v3 = vld [vmem:[%s2833_s6] ss:$0 sm:$0xff]  ;;  %s2305_s6 = smov [#allocation5]  }
 0x303   :  { %v1183_v16 = vadd.f32 %v2704_v19, %v1182_v62  ;;  %v1949_v11 = vpop.f32.mrb[62].mxu0  ;;  %v2236_v6 = vpop.eup %2235  ;;  %v1316_v30 = vadd.f32 1.0, %v2234_v1  ;;  %1983 = vmatmul.mubr.bf16.gmra.mrb[44].mxu1 %v1366_v0  ;;  %v1347_v26 = vmul.f32 %v1315_v7, %v1219_v27  ;;  %s1642_s9 = sshll.u32 %s2305_s6, 4  ;;  %s1643_s9 = int_to_ptr.vmem [resolvable:$true] %s1642_s9 }
 0x304   :  { %v1259_v35 = vmul.f32 0.70710677, %v1191_v63  ;;  %v1185_v37 = vpop.f32.mrb[63].mxu0  ;;  %v1314_v40 = vadd.f32 1.0, %v2236_v6  ;;  %v1194_v43 = vadd.f32 %v1949_v11, %v2704_v19  ;;  %v1345_v44 = vmul.f32 %v1313_v18, %v1217_v20  ;;  %s2275_s10 = scalar_lea.vmem %s1643_s9, 4096  ;;  %p2280_p9 = scmp.lt.s32.totalorder %s1643_s9, %s1643_s9 }
 0x305   :  { %v1257_v42 = vmul.f32 0.70710677, %v1183_v16  ;;  %v1348_v5 = vmul.f32 %v1316_v30, %v1220_v17  ;;  %v1186_v45 = vadd.f32 %v2704_v19, %v1185_v37  ;;  %v1227_v24 = vmul.f32 0.5, %v1191_v63  ;;  %p2276_p8 = scmp.ne.s32.totalorder %s1643_s9, %s2275_s10  ;;  %p2281_p10 = scmp.lt.s32.totalorder %s2275_s10, %s2275_s10 }
 0x306   :  { %2245 = verf.f32 %v1259_v35  ;;  %v1346_v21 = vmul.f32 %v1314_v40, %v1218_v28  ;;  %v1260_v31 = vmul.f32 0.70710677, %v1194_v43  ;;  %v1228_v14 = vmul.f32 0.5, %v1194_v43 }
 0x307   :  { %2247 = verf.f32 %v1257_v42  ;;  %v1258_v23 = vmul.f32 0.70710677, %v1186_v45  ;;  %v1368_v32 = vpack.c.bf16 %v1348_v5, %v1347_v26  ;;  %v1225_v50 = vmul.f32 0.5, %v1183_v16  ;;  %p2282_p11 = por %p2281_p10, %p2280_p9 }
 0x308   :  { %v2238_v22 = vpop.eup %2237  ;;  %2249 = verf.f32 %v1260_v31  ;;  %v1367_v51 = vpack.c.bf16 %v1346_v21, %v1345_v44  ;;  %v1226_v57 = vmul.f32 0.5, %v1186_v45 }
 0x309   :  { %v2240_v39 = vpop.eup %2239  ;;  %v1319_v33 = vadd.f32 1.0, %v2238_v22  ;;  %2251 = verf.f32 %v1258_v23  ;;  %p2283_p12 = pnand %p2282_p11, %p2276_p8 }
 0x30a   :  { %v2242_v46 = vpop.eup %2241  ;;  %v1317_v36 = vadd.f32 1.0, %v2240_v39  ;;  %1986 = vmatprep.mubr.bf16.mxu1 %v1367_v51 }
 0x30b   :  { %v2244_v38 = vpop.eup %2243  ;;  %v1320_v19 = vadd.f32 1.0, %v2242_v46  ;;  %1987 = vmatmul.mubr.bf16.gmra.mrb[48].mxu1 %v1368_v32  ;;  %v1351_v54 = vmul.f32 %v1319_v33, %v1223_v49 }
 0x30c   :  { %v1318_v47 = vadd.f32 1.0, %v2244_v38  ;;  %v1349_v29 = vmul.f32 %v1317_v36, %v1221_v53 }
 0x30d   :  { %v1352_v56 = vmul.f32 %v1320_v19, %v1224_v48 }
 0x30e   :  { %v1350_v58 = vmul.f32 %v1318_v47, %v1222_v41 }
 0x30f   :  { %v1370_v25 = vpack.c.bf16 %v1352_v56, %v1351_v54 }
 0x310   :  { %v2246_v2 = vpop.eup %2245  ;;  %v1369_v8 = vpack.c.bf16 %v1350_v58, %v1349_v29 }
 0x311   :  { %v2248_v4 = vpop.eup %2247  ;;  %v1323_v10 = vadd.f32 1.0, %v2246_v2 }
 0x312   :  { %v2250_v12 = vpop.eup %2249  ;;  %v1321_v13 = vadd.f32 1.0, %v2248_v4  ;;  %1990 = vmatprep.mubr.bf16.mxu1 %v1369_v8 }
 0x313   :  { %v2252_v52 = vpop.eup %2251  ;;  %v1324_v61 = vadd.f32 1.0, %v2250_v12  ;;  %1991 = vmatmul.mubr.bf16.gmra.mrb[52].mxu1 %v1370_v25  ;;  %v1355_v59 = vmul.f32 %v1323_v10, %v1227_v24 }
 0x314   :  { %v1322_v34 = vadd.f32 1.0, %v2252_v52  ;;  %v1353_v15 = vmul.f32 %v1321_v13, %v1225_v50 }
 0x315   :  { %v1356_v55 = vmul.f32 %v1324_v61, %v1228_v14 }
 0x316   :  { %v1354_v0 = vmul.f32 %v1322_v34, %v1226_v57 }
 0x317   :  { %v1372_v9 = vpack.c.bf16 %v1356_v55, %v1355_v59 }
 0x318   :  { %v1371_v60 = vpack.c.bf16 %v1354_v0, %v1353_v15 }
 0x31a   :  { %1994 = vmatprep.mubr.bf16.mxu1 %v1371_v60 }
 0x31b   :  { %1995 = vmatmul.mubr.bf16.gmra.mrb[56].mxu1 %v1372_v9 }
 0x3b6   :  { %v1968_v7 = vpop.f32.mrb[64].mxu0 }
 0x3b7   :  { %v1487_v63 = vadd.f32 %v1968_v7, %v2781_v3  ;;  %v1478_v62 = vpop.f32.mrb[65].mxu0 }
 0x3b8   :  { %v1479_v1 = vadd.f32 %v2781_v3, %v1478_v62  ;;  %v1969_v27 = vpop.f32.mrb[66].mxu0 }
 0x3b9   :  { %1607 = vst [vmem:[#allocation5 + $0x10] sm:$0xff] %v1487_v63  ;;  %v1490_v18 = vadd.f32 %v1969_v27, %v2781_v3  ;;  %v1481_v16 = vpop.f32.mrb[67].mxu0 }
 0x3ba   :  { %1605 = vst [vmem:[#allocation5] sm:$0xff] %v1479_v1  ;;  %v1482_v11 = vadd.f32 %v2781_v3, %v1481_v16 }
 0x3bb   :  { %1608 = vst [vmem:[#allocation5 + $0x18] sm:$0xff] %v1490_v18 }
 0x3bc   :  { %1606 = vst [vmem:[#allocation5 + $0x8] sm:$0xff] %v1482_v11 }
 0x3be   :  { %v1972_v6 = vpop.f32.mrb[32].mxu1 }
 0x3bf   :  { %v1503_v20 = vadd.f32 %v1972_v6, %v2781_v3  ;;  %v1494_v17 = vpop.f32.mrb[33].mxu1 }
 0x3c0   :  { %v1495_v30 = vadd.f32 %v2781_v3, %v1494_v17  ;;  %v1973_v35 = vpop.f32.mrb[34].mxu1 }
 0x3c1   :  { %1611 = vst [vmem:[#allocation5 + $0x30] sm:$0xff] %v1503_v20  ;;  %v1506_v37 = vadd.f32 %v1973_v35, %v2781_v3  ;;  %v1497_v28 = vpop.f32.mrb[35].mxu1 }
 0x3c2   :  { %1609 = vst [vmem:[#allocation5 + $0x20] sm:$0xff] %v1495_v30  ;;  %v1498_v40 = vadd.f32 %v2781_v3, %v1497_v28 }
 0x3c3   :  { %1612 = vst [vmem:[#allocation5 + $0x38] sm:$0xff] %v1506_v37 }
 0x3c4   :  { %1610 = vst [vmem:[#allocation5 + $0x28] sm:$0xff] %v1498_v40 }
 0x3c6   :  { %v1976_v42 = vpop.f32.mrb[36].mxu1 }
 0x3c7   :  { %v1519_v43 = vadd.f32 %v1976_v42, %v2781_v3  ;;  %v1510_v26 = vpop.f32.mrb[37].mxu1 }
 0x3c8   :  { %v1511_v5 = vadd.f32 %v2781_v3, %v1510_v26  ;;  %v1977_v45 = vpop.f32.mrb[38].mxu1 }
 0x3c9   :  { %1615 = vst [vmem:[#allocation5 + $0x50] sm:$0xff] %v1519_v43  ;;  %v1522_v44 = vadd.f32 %v1977_v45, %v2781_v3  ;;  %v1513_v21 = vpop.f32.mrb[39].mxu1 }
 0x3ca   :  { %1613 = vst [vmem:[#allocation5 + $0x40] sm:$0xff] %v1511_v5  ;;  %v1514_v31 = vadd.f32 %v2781_v3, %v1513_v21 }
 0x3cb   :  { %1616 = vst [vmem:[#allocation5 + $0x58] sm:$0xff] %v1522_v44 }
 0x3cc   :  { %1614 = vst [vmem:[#allocation5 + $0x48] sm:$0xff] %v1514_v31 }
 0x3ce   :  { %v1980_v22 = vpop.f32.mrb[40].mxu1 }
 0x3cf   :  { %v1535_v23 = vadd.f32 %v1980_v22, %v2781_v3  ;;  %v1526_v32 = vpop.f32.mrb[41].mxu1 }
 0x3d0   :  { %v1527_v39 = vadd.f32 %v2781_v3, %v1526_v32  ;;  %v1981_v51 = vpop.f32.mrb[42].mxu1 }
 0x3d1   :  { %1619 = vst [vmem:[#allocation5 + $0x70] sm:$0xff] %v1535_v23  ;;  %v1538_v33 = vadd.f32 %v1981_v51, %v2781_v3  ;;  %v1529_v46 = vpop.f32.mrb[43].mxu1 }
 0x3d2   :  { %1617 = vst [vmem:[#allocation5 + $0x60] sm:$0xff] %v1527_v39  ;;  %v1530_v36 = vadd.f32 %v2781_v3, %v1529_v46 }
 0x3d3   :  { %1620 = vst [vmem:[#allocation5 + $0x78] sm:$0xff] %v1538_v33 }
 0x3d4   :  { %1618 = vst [vmem:[#allocation5 + $0x68] sm:$0xff] %v1530_v36 }
 0x3d6   :  { %v1984_v38 = vpop.f32.mrb[44].mxu1 }
 0x3d7   :  { %v1551_v49 = vadd.f32 %v1984_v38, %v2781_v3  ;;  %v1542_v48 = vpop.f32.mrb[45].mxu1 }
 0x3d8   :  { %v1543_v19 = vadd.f32 %v2781_v3, %v1542_v48  ;;  %v1985_v53 = vpop.f32.mrb[46].mxu1 }
 0x3d9   :  { %1623 = vst [vmem:[#allocation5 + $0x90] sm:$0xff] %v1551_v49  ;;  %v1554_v41 = vadd.f32 %v1985_v53, %v2781_v3  ;;  %v1545_v47 = vpop.f32.mrb[47].mxu1 }
 0x3da   :  { %1621 = vst [vmem:[#allocation5 + $0x80] sm:$0xff] %v1543_v19  ;;  %v1546_v54 = vadd.f32 %v2781_v3, %v1545_v47 }
 0x3db   :  { %1624 = vst [vmem:[#allocation5 + $0x98] sm:$0xff] %v1554_v41 }
 0x3dc   :  { %1622 = vst [vmem:[#allocation5 + $0x88] sm:$0xff] %v1546_v54 }
 0x3de   :  { %v1988_v56 = vpop.f32.mrb[48].mxu1 }
 0x3df   :  { %v1567_v29 = vadd.f32 %v1988_v56, %v2781_v3  ;;  %v1558_v58 = vpop.f32.mrb[49].mxu1 }
 0x3e0   :  { %v1559_v2 = vadd.f32 %v2781_v3, %v1558_v58  ;;  %v1989_v25 = vpop.f32.mrb[50].mxu1 }
 0x3e1   :  { %1627 = vst [vmem:[#allocation5 + $0xb0] sm:$0xff] %v1567_v29  ;;  %v1570_v4 = vadd.f32 %v1989_v25, %v2781_v3  ;;  %v1561_v8 = vpop.f32.mrb[51].mxu1 }
 0x3e2   :  { %1625 = vst [vmem:[#allocation5 + $0xa0] sm:$0xff] %v1559_v2  ;;  %v1562_v10 = vadd.f32 %v2781_v3, %v1561_v8 }
 0x3e3   :  { %1628 = vst [vmem:[#allocation5 + $0xb8] sm:$0xff] %v1570_v4 }
 0x3e4   :  { %1626 = vst [vmem:[#allocation5 + $0xa8] sm:$0xff] %v1562_v10 }
 0x3e6   :  { %v1992_v12 = vpop.f32.mrb[52].mxu1 }
 0x3e7   :  { %v1583_v13 = vadd.f32 %v1992_v12, %v2781_v3  ;;  %v1574_v52 = vpop.f32.mrb[53].mxu1 }
 0x3e8   :  { %v1575_v24 = vadd.f32 %v2781_v3, %v1574_v52  ;;  %v1993_v14 = vpop.f32.mrb[54].mxu1 }
 0x3e9   :  { %1631 = vst [vmem:[#allocation5 + $0xd0] sm:$0xff] %v1583_v13  ;;  %v1586_v61 = vadd.f32 %v1993_v14, %v2781_v3  ;;  %v1577_v50 = vpop.f32.mrb[55].mxu1 }
 0x3ea   :  { %1629 = vst [vmem:[#allocation5 + $0xc0] sm:$0xff] %v1575_v24  ;;  %v1578_v57 = vadd.f32 %v2781_v3, %v1577_v50 }
 0x3eb   :  { %1632 = vst [vmem:[#allocation5 + $0xd8] sm:$0xff] %v1586_v61 }
 0x3ec   :  { %1630 = vst [vmem:[#allocation5 + $0xc8] sm:$0xff] %v1578_v57 }
 0x3ee   :  { %v1996_v34 = vpop.f32.mrb[56].mxu1 }
 0x3ef   :  { %v1599_v59 = vadd.f32 %v1996_v34, %v2781_v3  ;;  %v1590_v55 = vpop.f32.mrb[57].mxu1 }
 0x3f0   :  { %v1591_v15 = vadd.f32 %v2781_v3, %v1590_v55  ;;  %v1997_v0 = vpop.f32.mrb[58].mxu1 }
 0x3f1   :  { %1635 = vst [vmem:[#allocation5 + $0xf0] sm:$0xff] %v1599_v59  ;;  %v1602_v9 = vadd.f32 %v1997_v0, %v2781_v3  ;;  %v1593_v60 = vpop.f32.mrb[59].mxu1 }
 0x3f2   :  { %1633 = vst [vmem:[#allocation5 + $0xe0] sm:$0xff] %v1591_v15  ;;  %v1594_v7 = vadd.f32 %v2781_v3, %v1593_v60 }
 0x3f3   :  { %1636 = vst [vmem:[#allocation5 + $0xf8] sm:$0xff] %v1602_v9 }
 0x3f4   :  { %1634 = vst [vmem:[#allocation5 + $0xe8] sm:$0xff] %v1594_v7 }
 0x3f5   :  { %2286 = shalt.err (!%p2283_p12)
}
 0x3f6   :  { %s2287_s13 = scalar_lea.hbm %s2834_s7, 4096 }
 0x3f7   :  { %p2288_p13 = scmp.ne.s32.totalorder %s2834_s7, %s2287_s13  ;;  %p2291_p0 = scmp.lt.u32.totalorder %s2287_s13, %s2834_s7 }
 0x3f9   :  { %p2293_p1 = pnand %p2291_p0, %p2288_p13 }
 0x3fb   :  { %2296 = shalt.err (!%p2293_p1)
}
 0x3fc   :  { %s2306_s18 = smov 128   ;;  %s2307_s5 = smov 8  }
 0x3fd   :  { %1648 = dma.vmem_to_hbm [thread:$0]  %s1643_s9, 4096, %s2834_s7, [#allocation4], %s2306_s18, %s2306_s18, %s2307_s5  }
 0x3fe   :  { %2299 = dma.done.wait [#allocation4], 4096  }
 0x3ff   :  { %2300 = vsyncadd [#allocation4], 4294963200 }
 0x400   :  { %1652 = vsyncpa [#allocation3], 1 }
 0x401   :  { %1653 = vsyncpa [#allocation4], 1 }

</bundles_post_ra>
